<compile_context>
chip_gen: v7x
topology: tpu7x:2x2x1
jax: 0.10.0
libtpu: 0.0.40
codegen_flags: <defaults>
</compile_context>

<pallas_src>
import functools

import jax
import jax.numpy as jnp
from jax.experimental import pallas as pl
from jax.experimental.pallas import tpu as pltpu


def _round_up(x, m):
    return (x + m - 1) // m * m


_VMEM_LIMIT = 32 * 1024 * 1024    # explicit scoped-VMEM limit (safe on v5e/v6e/v7x)
_TILE_BUDGET = 12 * 1024 * 1024   # per-call double-buffered working-set target


# --------------------------------------------------------------------------
# Generic tiled (M, K) @ (K, N) + (1, N) kernel.  Used for both the hoisted
# input projection and the output (vocab) projection.
# --------------------------------------------------------------------------
def _matmul_bias_kernel(x_ref, w_ref, b_ref, o_ref):
    o_ref[...] = (jnp.dot(x_ref[...].astype(jnp.bfloat16), w_ref[...],
                          preferred_element_type=jnp.float32)
                  + b_ref[...]).astype(o_ref.dtype)


def _matmul_bias(x, w, b, out_dtype=jnp.float32):
    """Tiled matmul + bias with the output-column axis as the OUTER grid axis,
    so the weight streams from HBM exactly once."""
    M, K = x.shape
    N = w.shape[1]
    x_bytes = x.dtype.itemsize

    tm = next((c for c in (512, 256, 128, 64, 32, 16) if M % c == 0), M)
    tn = next((c for c in (2048, 1024, 512, 256, 128) if N % c == 0), N)

    def _bytes(tm_, tn_):
        # double-buffered activation / weight / bias blocks + f32 output block
        return 2 * (tm_ * K * x_bytes + K * tn_ * 2 + tn_ * 4 + tm_ * tn_ * 4)

    while _bytes(tm, tn) > _TILE_BUDGET and tn > 128 and tn % 2 == 0:
        tn //= 2
    while _bytes(tm, tn) > _TILE_BUDGET and tm > 16 and tm % 2 == 0:
        tm //= 2

    return pl.pallas_call(
        _matmul_bias_kernel,
        out_shape=jax.ShapeDtypeStruct((M, N), out_dtype),
        grid_spec=pltpu.PrefetchScalarGridSpec(
            num_scalar_prefetch=0,
            grid=(N // tn, M // tm),                 # vocab/output cols outer
            in_specs=[
                pl.BlockSpec((tm, K), lambda j, i: (i, 0)),   # activation rows
                pl.BlockSpec((K, tn), lambda j, i: (0, j)),   # weight tile
                pl.BlockSpec((1, tn), lambda j, i: (0, j)),   # bias tile
            ],
            out_specs=pl.BlockSpec((tm, tn), lambda j, i: (i, j)),
        ),
        compiler_params=pltpu.CompilerParams(
            dimension_semantics=("parallel", "parallel"),
            vmem_limit_bytes=_VMEM_LIMIT),
    )(x, w, b)


# --------------------------------------------------------------------------
# Serial tanh-RNN recurrence: h_t = tanh(pre_x_t + h_{t-1} @ Whh^T).
# Grid = (batch_blocks ["parallel"], time_chunks ["arbitrary"]).
# --------------------------------------------------------------------------
def _rnn_recurrence_kernel(px_ref, h0_ref, whh_ref, hs_ref, hn_ref, h_carry,
                           *, chunk, seq_len):
    c = pl.program_id(1)

    @pl.when(c == 0)
    def _():
        h_carry[...] = h0_ref[...]          # (Bb, H) f32 carry per batch block

    h = h_carry[...]
    whh = whh_ref[...]                      # hoisted weight read (bf16)
    last_c = (seq_len - 1) // chunk         # grid step of last REAL timestep
    last_t = (seq_len - 1) % chunk          # static position inside the chunk
    for t in range(chunk):                  # fully unrolled, t is static
        pre = px_ref[:, t, :] + jnp.dot(h.astype(jnp.bfloat16), whh,
                                        preferred_element_type=jnp.float32)
        h = jnp.tanh(pre)                   # f32
        hs_ref[:, t, :] = h                 # f32 tape row (no bf16 packing RMW)
        if t == last_t:
            @pl.when(c == last_c)
            def _():
                hn_ref[...] = h             # final hidden at the last real step
    h_carry[...] = h


def decoder_forward(inputs, hidden, params):
    """inputs: (B, S) int32 token ids; hidden: (1, B, H) float32.

    Returns (output, hidden) with shapes (B, S, V) and (1, B, H), matching
    the PyTorch Decoder.forward semantics.
    """
    emb_table = params["embedding"]                  # (V, H)
    w_ih, w_hh = params["w_ih"], params["w_hh"]      # (H, H) PyTorch (out,in)
    b_ih, b_hh = params["b_ih"], params["b_hh"]      # (H,)
    w_out, b_out = params["w_out"], params["b_out"]  # (V, H), (V,)

    B, S = inputs.shape
    H = emb_table.shape[1]
    V = w_out.shape[0]

    B_p = _round_up(B, 8)
    H_p = _round_up(H, 128)
    V_p = _round_up(V, 128)

    # Megacore: split independent batch rows across both v7x TensorCores when
    # there are at least two 8-row blocks (no-op for small B / 1-TC chips).
    nb = 2 if B_p % 16 == 0 else 1
    Bb = B_p // nb

    # Time chunk: amortize per-grid-step overhead, capped by the VMEM budget.
    chunk = S if S <= 64 else 64

    def _chunk_bytes(c):
        return (4 * Bb * c * H_p * 4        # pre_x in + hs out, double-buffered
                + 2 * H_p * H_p * 2         # Whh^T bf16 (2 buffers)
                + 6 * Bb * H_p * 4)         # h0 / h_n / carry
    while _chunk_bytes(chunk) > _TILE_BUDGET and chunk > 8:
        chunk = max(8, (chunk // 2) // 8 * 8)
    S_p = _round_up(S, chunk)               # pad S (never pull whole tape at once)
    n_chunks = S_p // chunk

    # --- glue: embedding gather + zero padding + bf16 weight prep ----------
    # TODO(synk): the embedding row gather stays in XLA (jnp.take); it has no
    # clean blockwise Pallas tiling for arbitrary token ids.
    embedded = jnp.take(emb_table, inputs, axis=0)                 # (B, S, H)
    x = jnp.pad(embedded, ((0, B_p - B), (0, S_p - S), (0, H_p - H)))
    x_flat = x.astype(jnp.bfloat16).reshape(B_p * S_p, H_p)

    h0 = jnp.pad(hidden[0], ((0, B_p - B), (0, H_p - H)))          # (B_p, H_p)
    wih_t = jnp.pad(w_ih.T, ((0, H_p - H), (0, H_p - H))).astype(jnp.bfloat16)
    whh_t = jnp.pad(w_hh.T, ((0, H_p - H), (0, H_p - H))).astype(jnp.bfloat16)
    b_rnn = jnp.pad(b_ih + b_hh, (0, H_p - H)).reshape(1, H_p)     # f32
    wout_t = jnp.pad(w_out.T, ((0, H_p - H), (0, V_p - V))).astype(jnp.bfloat16)
    bout = jnp.pad(b_out, (0, V_p - V)).reshape(1, V_p)            # f32

    # --- hoisted input projection: pre_x = X @ Wih^T + (b_ih + b_hh) -------
    pre_x = _matmul_bias(x_flat, wih_t, b_rnn).reshape(B_p, S_p, H_p)  # f32

    # --- serial recurrence --------------------------------------------------
    hs, h_n = pl.pallas_call(
        functools.partial(_rnn_recurrence_kernel, chunk=chunk, seq_len=S),
        out_shape=(
            jax.ShapeDtypeStruct((B_p, S_p, H_p), jnp.float32),    # hidden tape
            jax.ShapeDtypeStruct((B_p, H_p), jnp.float32),         # final hidden
        ),
        grid_spec=pltpu.PrefetchScalarGridSpec(
            num_scalar_prefetch=0,
            grid=(nb, n_chunks),
            in_specs=[
                pl.BlockSpec((Bb, chunk, H_p), lambda b, c: (b, c, 0)),  # pre_x
                pl.BlockSpec((Bb, H_p), lambda b, c: (b, 0)),            # h0
                pl.BlockSpec((H_p, H_p), lambda b, c: (0, 0)),           # Whh^T
            ],
            out_specs=(
                pl.BlockSpec((Bb, chunk, H_p), lambda b, c: (b, c, 0)),  # tape
                pl.BlockSpec((Bb, H_p), lambda b, c: (b, 0)),            # h_n
            ),
            scratch_shapes=[pltpu.VMEM((Bb, H_p), jnp.float32)],
        ),
        compiler_params=pltpu.CompilerParams(
            dimension_semantics=("parallel", "arbitrary"),
            vmem_limit_bytes=_VMEM_LIMIT),
    )(pre_x, h0, whh_t)

    # --- output projection (dominant FLOPs), vocab-outer tiling ------------
    hs_flat = hs.reshape(B_p * S_p, H_p)                 # contiguous, free
    logits_flat = _matmul_bias(hs_flat, wout_t, bout)    # (B_p*S_p, V_p) f32

    logits = logits_flat.reshape(B_p, S_p, V_p)
    if (B_p, S_p, V_p) != (B, S, V):                     # skip copy when unpadded
        logits = logits[:B, :S, :V]
    h_last = h_n
    if (B_p, H_p) != (B, H):
        h_last = h_last[:B, :H]
    return logits, h_last[None, :, :]


# --------------------------------------------------------------------------
# Pure-JAX references.
# --------------------------------------------------------------------------
def _reference_forward(inputs, hidden, params, use_bf16):
    """PyTorch Decoder.forward math; optionally with the same bf16 casts as
    the kernel (f32 accumulation, f32 carry/tanh)."""
    cast = (lambda a: a.astype(jnp.bfloat16)) if use_bf16 else (lambda a: a)
    emb = cast(jnp.take(params["embedding"], inputs, axis=0))   # (B, S, H)
    wih = cast(params["w_ih"].T)
    whh = cast(params["w_hh"].T)
    wout = cast(params["w_out"].T)
    b = params["b_ih"] + params["b_hh"]
    h = hidden[0]
    outs = []
    for t in range(inputs.shape[1]):
        pre = (jnp.dot(emb[:, t, :], wih, preferred_element_type=jnp.float32)
               + jnp.dot(cast(h), whh, preferred_element_type=jnp.float32)
               + b)
        h = jnp.tanh(pre)
        outs.append(jnp.dot(cast(h), wout, preferred_element_type=jnp.float32)
                    + params["b_out"])
    return jnp.stack(outs, axis=1), h[None, :, :]


def init_params(key, hidden_size, output_size):
    ks = jax.random.split(key, 7)
    scale = 1.0 / jnp.sqrt(hidden_size)
    return {
        "embedding": jax.random.normal(ks[0], (output_size, hidden_size),
                                       jnp.float32),
        "w_ih": jax.random.uniform(ks[1], (hidden_size, hidden_size),
                                   jnp.float32, -scale, scale),
        "w_hh": jax.random.uniform(ks[2], (hidden_size, hidden_size),
                                   jnp.float32, -scale, scale),
        "b_ih": jax.random.uniform(ks[3], (hidden_size,), jnp.float32,
                                   -scale, scale),
        "b_hh": jax.random.uniform(ks[4], (hidden_size,), jnp.float32,
                                   -scale, scale),
        "w_out": jax.random.uniform(ks[5], (output_size, hidden_size),
                                    jnp.float32, -scale, scale),
        "b_out": jax.random.uniform(ks[6], (output_size,), jnp.float32,
                                    -scale, scale),
    }


if __name__ == "__main__":
    B, S, H, V = 2, 8, 32, 64   # batch, seq, hidden_size, output_size

    key = jax.random.PRNGKey(0)
    k_par, k_inp, k_hid = jax.random.split(key, 3)

    params = init_params(k_par, H, V)
    inputs = jax.random.randint(k_inp, (B, S), 0, V, dtype=jnp.int32)
    hidden = jax.random.normal(k_hid, (1, B, H), jnp.float32)

    out, h_n = jax.jit(decoder_forward)(inputs, hidden, params)
    out = jax.block_until_ready(out)
    h_n = jax.block_until_ready(h_n)
    assert out.shape == (B, S, V) and h_n.shape == (1, B, H)

    # Tight check: JAX reference using the same bf16/f32 mixed precision.
    ref_out_m, ref_h_m = _reference_forward(inputs, hidden, params,
                                            use_bf16=True)
    assert jnp.allclose(out, ref_out_m, atol=1e-2, rtol=1e-2)
    assert jnp.allclose(h_n, ref_h_m, atol=1e-2, rtol=1e-2)

    # Loose check: exact float32 PyTorch-style math (bf16 weight quantization
    # noise only).
    ref_out_f, ref_h_f = _reference_forward(inputs, hidden, params,
                                            use_bf16=False)
    assert jnp.allclose(out, ref_out_f, atol=1e-1, rtol=1e-1)
    assert jnp.allclose(h_n, ref_h_f, atol=1e-1, rtol=1e-1)

    print("KERNEL_OK")
</pallas_src>

<mosaic_0001>
module attributes {stable_mosaic.version = 11 : i64} {
  func.func @_matmul_bias_kernel(%arg0: i32, %arg1: i32, %arg2: memref<64x128xbf16, #tpu.memory_space<vmem>>, %arg3: memref<128x128xbf16, #tpu.memory_space<vmem>>, %arg4: memref<1x128xf32, #tpu.memory_space<vmem>>, %arg5: memref<64x128xf32, #tpu.memory_space<vmem>>) attributes {dimension_semantics = [#tpu.dimension_semantics<parallel>, #tpu.dimension_semantics<parallel>], iteration_bounds = array<i64: 1, 1>, scalar_prefetch = 0 : i64, scratch_operands = 0 : i64, tpu.core_type = #tpu.core_type<tc>, window_params = [{transform_indices = @transform_0, window_bounds = array<i64: 64, 128>}, {transform_indices = @transform_1, window_bounds = array<i64: 128, 128>}, {transform_indices = @transform_2, window_bounds = array<i64: 1, 128>}, {transform_indices = @transform_3, window_bounds = array<i64: 64, 128>}]} {
    %c0 = arith.constant 0 : index
    %c0_0 = arith.constant 0 : index
    %0 = vector.load %arg2[%c0, %c0_0] : memref<64x128xbf16, #tpu.memory_space<vmem>>, vector<64x128xbf16>
    %c0_1 = arith.constant 0 : index
    %c0_2 = arith.constant 0 : index
    %1 = vector.load %arg3[%c0_1, %c0_2] : memref<128x128xbf16, #tpu.memory_space<vmem>>, vector<128x128xbf16>
    %cst = arith.constant dense<0.000000e+00> : vector<64x128xf32>
    %2 = tpu.matmul %0, %1, %cst {dimension_numbers = #tpu.dot_dimension_numbers<[1], [0], [0], [1], [0, 0, 1, 1], [], []>} : vector<64x128xbf16>, vector<128x128xbf16>, vector<64x128xf32> -> vector<64x128xf32>
    %c0_3 = arith.constant 0 : index
    %c0_4 = arith.constant 0 : index
    %3 = vector.load %arg4[%c0_3, %c0_4] : memref<1x128xf32, #tpu.memory_space<vmem>>, vector<1x128xf32>
    %4 = vector.broadcast %3 : vector<1x128xf32> to vector<64x128xf32>
    %5 = arith.addf %2, %4 : vector<64x128xf32>
    %c0_5 = arith.constant 0 : index
    %c0_6 = arith.constant 0 : index
    %6 = vector.load %arg5[%c0_5, %c0_6] : memref<64x128xf32, #tpu.memory_space<vmem>>, vector<64x128xf32>
    tpu.vector_store %arg5[%c0_5, %c0_6], %5 {strides = array<i32>} : memref<64x128xf32, #tpu.memory_space<vmem>>, vector<64x128xf32>,
    return
  }
  func.func @transform_0(%arg0: i32, %arg1: i32) -> (i32, i32) {
    %c0_i32 = arith.constant 0 : i32
    %c0_i32_0 = arith.constant 0 : i32
    return %arg1, %c0_i32 : i32, i32
  }
  func.func @transform_1(%arg0: i32, %arg1: i32) -> (i32, i32) {
    %c0_i32 = arith.constant 0 : i32
    %c0_i32_0 = arith.constant 0 : i32
    return %c0_i32, %arg0 : i32, i32
  }
  func.func @transform_2(%arg0: i32, %arg1: i32) -> (i32, i32) {
    %c0_i32 = arith.constant 0 : i32
    %c0_i32_0 = arith.constant 0 : i32
    return %c0_i32, %arg0 : i32, i32
  }
  func.func @transform_3(%arg0: i32, %arg1: i32) -> (i32, i32) {
    %c0_i32 = arith.constant 0 : i32
    return %arg1, %arg0 : i32, i32
  }
}

module attributes {stable_mosaic.version = 11 : i64} {
  func.func @_rnn_recurrence_kernel(%arg0: i32, %arg1: i32, %arg2: memref<8x8x128xf32, #tpu.memory_space<vmem>>, %arg3: memref<8x128xf32, #tpu.memory_space<vmem>>, %arg4: memref<128x128xbf16, #tpu.memory_space<vmem>>, %arg5: memref<8x8x128xf32, #tpu.memory_space<vmem>>, %arg6: memref<8x128xf32, #tpu.memory_space<vmem>>, %arg7: memref<8x128xf32, #tpu.memory_space<vmem>>) attributes {dimension_semantics = [#tpu.dimension_semantics<parallel>, #tpu.dimension_semantics<arbitrary>], iteration_bounds = array<i64: 1, 1>, scalar_prefetch = 0 : i64, scratch_operands = 1 : i64, tpu.core_type = #tpu.core_type<tc>, window_params = [{transform_indices = @transform_0, window_bounds = array<i64: 8, 8, 128>}, {transform_indices = @transform_1, window_bounds = array<i64: 8, 128>}, {pipeline_mode = #tpu.pipeline_mode<synchronous>, transform_indices = @transform_2, window_bounds = array<i64: 128, 128>}, {transform_indices = @transform_3, window_bounds = array<i64: 8, 8, 128>}, {transform_indices = @transform_4, window_bounds = array<i64: 8, 128>}]} {
    %c0_i32 = arith.constant 0 : i32
    %0 = arith.cmpi eq, %arg1, %c0_i32 : i32
    %1 = arith.extui %0 : i1 to i32
    %c0_i32_0 = arith.constant 0 : i32
    %2 = arith.cmpi ne, %1, %c0_i32_0 : i32
    scf.if %2 {
      %c0_56 = arith.constant 0 : index
      %c0_57 = arith.constant 0 : index
      %81 = vector.load %arg3[%c0_56, %c0_57] : memref<8x128xf32, #tpu.memory_space<vmem>>, vector<8x128xf32>
      %c0_58 = arith.constant 0 : index
      %c0_59 = arith.constant 0 : index
      %82 = vector.load %arg7[%c0_58, %c0_59] : memref<8x128xf32, #tpu.memory_space<vmem>>, vector<8x128xf32>
      tpu.vector_store %arg7[%c0_58, %c0_59], %81 {strides = array<i32>} : memref<8x128xf32, #tpu.memory_space<vmem>>, vector<8x128xf32>,
    } else {
    }
    %c0 = arith.constant 0 : index
    %c0_1 = arith.constant 0 : index
    %3 = vector.load %arg7[%c0, %c0_1] : memref<8x128xf32, #tpu.memory_space<vmem>>, vector<8x128xf32>
    %c0_2 = arith.constant 0 : index
    %c0_3 = arith.constant 0 : index
    %4 = vector.load %arg4[%c0_2, %c0_3] : memref<128x128xbf16, #tpu.memory_space<vmem>>, vector<128x128xbf16>
    %c0_4 = arith.constant 0 : index
    %c0_5 = arith.constant 0 : index
    %c0_6 = arith.constant 0 : index
    %5 = vector.load %arg2[%c0_4, %c0_5, %c0_6] : memref<8x8x128xf32, #tpu.memory_space<vmem>>, vector<8x1x128xf32>
    %6 = vector.shape_cast %5 : vector<8x1x128xf32> to vector<8x128xf32>
    %7 = arith.truncf %3 : vector<8x128xf32> to vector<8x128xbf16>
    %cst = arith.constant dense<0.000000e+00> : vector<8x128xf32>
    %8 = tpu.matmul %7, %4, %cst {dimension_numbers = #tpu.dot_dimension_numbers<[1], [0], [0], [1], [0, 0, 1, 1], [], []>} : vector<8x128xbf16>, vector<128x128xbf16>, vector<8x128xf32> -> vector<8x128xf32>
    %9 = arith.addf %6, %8 : vector<8x128xf32>
    %10 = math.tanh %9 : vector<8x128xf32>
    %c0_7 = arith.constant 0 : index
    %c0_8 = arith.constant 0 : index
    %c0_9 = arith.constant 0 : index
    %11 = vector.load %arg5[%c0_7, %c0_8, %c0_9] : memref<8x8x128xf32, #tpu.memory_space<vmem>>, vector<8x1x128xf32>
    %12 = vector.shape_cast %11 : vector<8x1x128xf32> to vector<8x128xf32>
    %13 = vector.shape_cast %10 : vector<8x128xf32> to vector<8x1x128xf32>
    tpu.vector_store %arg5[%c0_7, %c0_8, %c0_9], %13 {strides = array<i32>} : memref<8x8x128xf32, #tpu.memory_space<vmem>>, vector<8x1x128xf32>,
    %c0_10 = arith.constant 0 : index
    %c1 = arith.constant 1 : index
    %c0_11 = arith.constant 0 : index
    %14 = vector.load %arg2[%c0_10, %c1, %c0_11] : memref<8x8x128xf32, #tpu.memory_space<vmem>>, vector<8x1x128xf32>
    %15 = vector.shape_cast %14 : vector<8x1x128xf32> to vector<8x128xf32>
    %16 = arith.truncf %10 : vector<8x128xf32> to vector<8x128xbf16>
    %cst_12 = arith.constant dense<0.000000e+00> : vector<8x128xf32>
    %17 = tpu.matmul %16, %4, %cst_12 {dimension_numbers = #tpu.dot_dimension_numbers<[1], [0], [0], [1], [0, 0, 1, 1], [], []>} : vector<8x128xbf16>, vector<128x128xbf16>, vector<8x128xf32> -> vector<8x128xf32>
    %18 = arith.addf %15, %17 : vector<8x128xf32>
    %19 = math.tanh %18 : vector<8x128xf32>
    %c0_13 = arith.constant 0 : index
    %c1_14 = arith.constant 1 : index
    %c0_15 = arith.constant 0 : index
    %20 = vector.load %arg5[%c0_13, %c1_14, %c0_15] : memref<8x8x128xf32, #tpu.memory_space<vmem>>, vector<8x1x128xf32>
    %21 = vector.shape_cast %20 : vector<8x1x128xf32> to vector<8x128xf32>
    %22 = vector.shape_cast %19 : vector<8x128xf32> to vector<8x1x128xf32>
    tpu.vector_store %arg5[%c0_13, %c1_14, %c0_15], %22 {strides = array<i32>} : memref<8x8x128xf32, #tpu.memory_space<vmem>>, vector<8x1x128xf32>,
    %c0_16 = arith.constant 0 : index
    %c2 = arith.constant 2 : index
    %c0_17 = arith.constant 0 : index
    %23 = vector.load %arg2[%c0_16, %c2, %c0_17] : memref<8x8x128xf32, #tpu.memory_space<vmem>>, vector<8x1x128xf32>
    %24 = vector.shape_cast %23 : vector<8x1x128xf32> to vector<8x128xf32>
    %25 = arith.truncf %19 : vector<8x128xf32> to vector<8x128xbf16>
    %cst_18 = arith.constant dense<0.000000e+00> : vector<8x128xf32>
    %26 = tpu.matmul %25, %4, %cst_18 {dimension_numbers = #tpu.dot_dimension_numbers<[1], [0], [0], [1], [0, 0, 1, 1], [], []>} : vector<8x128xbf16>, vector<128x128xbf16>, vector<8x128xf32> -> vector<8x128xf32>
    %27 = arith.addf %24, %26 : vector<8x128xf32>
    %28 = math.tanh %27 : vector<8x128xf32>
    %c0_19 = arith.constant 0 : index
    %c2_20 = arith.constant 2 : index
    %c0_21 = arith.constant 0 : index
    %29 = vector.load %arg5[%c0_19, %c2_20, %c0_21] : memref<8x8x128xf32, #tpu.memory_space<vmem>>, vector<8x1x128xf32>
    %30 = vector.shape_cast %29 : vector<8x1x128xf32> to vector<8x128xf32>
    %31 = vector.shape_cast %28 : vector<8x128xf32> to vector<8x1x128xf32>
    tpu.vector_store %arg5[%c0_19, %c2_20, %c0_21], %31 {strides = array<i32>} : memref<8x8x128xf32, #tpu.memory_space<vmem>>, vector<8x1x128xf32>,
    %c0_22 = arith.constant 0 : index
    %c3 = arith.constant 3 : index
    %c0_23 = arith.constant 0 : index
    %32 = vector.load %arg2[%c0_22, %c3, %c0_23] : memref<8x8x128xf32, #tpu.memory_space<vmem>>, vector<8x1x128xf32>
    %33 = vector.shape_cast %32 : vector<8x1x128xf32> to vector<8x128xf32>
    %34 = arith.truncf %28 : vector<8x128xf32> to vector<8x128xbf16>
    %cst_24 = arith.constant dense<0.000000e+00> : vector<8x128xf32>
    %35 = tpu.matmul %34, %4, %cst_24 {dimension_numbers = #tpu.dot_dimension_numbers<[1], [0], [0], [1], [0, 0, 1, 1], [], []>} : vector<8x128xbf16>, vector<128x128xbf16>, vector<8x128xf32> -> vector<8x128xf32>
    %36 = arith.addf %33, %35 : vector<8x128xf32>
    %37 = math.tanh %36 : vector<8x128xf32>
    %c0_25 = arith.constant 0 : index
    %c3_26 = arith.constant 3 : index
    %c0_27 = arith.constant 0 : index
    %38 = vector.load %arg5[%c0_25, %c3_26, %c0_27] : memref<8x8x128xf32, #tpu.memory_space<vmem>>, vector<8x1x128xf32>
    %39 = vector.shape_cast %38 : vector<8x1x128xf32> to vector<8x128xf32>
    %40 = vector.shape_cast %37 : vector<8x128xf32> to vector<8x1x128xf32>
    tpu.vector_store %arg5[%c0_25, %c3_26, %c0_27], %40 {strides = array<i32>} : memref<8x8x128xf32, #tpu.memory_space<vmem>>, vector<8x1x128xf32>,
    %c0_28 = arith.constant 0 : index
    %c4 = arith.constant 4 : index
    %c0_29 = arith.constant 0 : index
    %41 = vector.load %arg2[%c0_28, %c4, %c0_29] : memref<8x8x128xf32, #tpu.memory_space<vmem>>, vector<8x1x128xf32>
    %42 = vector.shape_cast %41 : vector<8x1x128xf32> to vector<8x128xf32>
    %43 = arith.truncf %37 : vector<8x128xf32> to vector<8x128xbf16>
    %cst_30 = arith.constant dense<0.000000e+00> : vector<8x128xf32>
    %44 = tpu.matmul %43, %4, %cst_30 {dimension_numbers = #tpu.dot_dimension_numbers<[1], [0], [0], [1], [0, 0, 1, 1], [], []>} : vector<8x128xbf16>, vector<128x128xbf16>, vector<8x128xf32> -> vector<8x128xf32>
    %45 = arith.addf %42, %44 : vector<8x128xf32>
    %46 = math.tanh %45 : vector<8x128xf32>
    %c0_31 = arith.constant 0 : index
    %c4_32 = arith.constant 4 : index
    %c0_33 = arith.constant 0 : index
    %47 = vector.load %arg5[%c0_31, %c4_32, %c0_33] : memref<8x8x128xf32, #tpu.memory_space<vmem>>, vector<8x1x128xf32>
    %48 = vector.shape_cast %47 : vector<8x1x128xf32> to vector<8x128xf32>
    %49 = vector.shape_cast %46 : vector<8x128xf32> to vector<8x1x128xf32>
    tpu.vector_store %arg5[%c0_31, %c4_32, %c0_33], %49 {strides = array<i32>} : memref<8x8x128xf32, #tpu.memory_space<vmem>>, vector<8x1x128xf32>,
    %c0_34 = arith.constant 0 : index
    %c5 = arith.constant 5 : index
    %c0_35 = arith.constant 0 : index
    %50 = vector.load %arg2[%c0_34, %c5, %c0_35] : memref<8x8x128xf32, #tpu.memory_space<vmem>>, vector<8x1x128xf32>
    %51 = vector.shape_cast %50 : vector<8x1x128xf32> to vector<8x128xf32>
    %52 = arith.truncf %46 : vector<8x128xf32> to vector<8x128xbf16>
    %cst_36 = arith.constant dense<0.000000e+00> : vector<8x128xf32>
    %53 = tpu.matmul %52, %4, %cst_36 {dimension_numbers = #tpu.dot_dimension_numbers<[1], [0], [0], [1], [0, 0, 1, 1], [], []>} : vector<8x128xbf16>, vector<128x128xbf16>, vector<8x128xf32> -> vector<8x128xf32>
    %54 = arith.addf %51, %53 : vector<8x128xf32>
    %55 = math.tanh %54 : vector<8x128xf32>
    %c0_37 = arith.constant 0 : index
    %c5_38 = arith.constant 5 : index
    %c0_39 = arith.constant 0 : index
    %56 = vector.load %arg5[%c0_37, %c5_38, %c0_39] : memref<8x8x128xf32, #tpu.memory_space<vmem>>, vector<8x1x128xf32>
    %57 = vector.shape_cast %56 : vector<8x1x128xf32> to vector<8x128xf32>
    %58 = vector.shape_cast %55 : vector<8x128xf32> to vector<8x1x128xf32>
    tpu.vector_store %arg5[%c0_37, %c5_38, %c0_39], %58 {strides = array<i32>} : memref<8x8x128xf32, #tpu.memory_space<vmem>>, vector<8x1x128xf32>,
    %c0_40 = arith.constant 0 : index
    %c6 = arith.constant 6 : index
    %c0_41 = arith.constant 0 : index
    %59 = vector.load %arg2[%c0_40, %c6, %c0_41] : memref<8x8x128xf32, #tpu.memory_space<vmem>>, vector<8x1x128xf32>
    %60 = vector.shape_cast %59 : vector<8x1x128xf32> to vector<8x128xf32>
    %61 = arith.truncf %55 : vector<8x128xf32> to vector<8x128xbf16>
    %cst_42 = arith.constant dense<0.000000e+00> : vector<8x128xf32>
    %62 = tpu.matmul %61, %4, %cst_42 {dimension_numbers = #tpu.dot_dimension_numbers<[1], [0], [0], [1], [0, 0, 1, 1], [], []>} : vector<8x128xbf16>, vector<128x128xbf16>, vector<8x128xf32> -> vector<8x128xf32>
    %63 = arith.addf %60, %62 : vector<8x128xf32>
    %64 = math.tanh %63 : vector<8x128xf32>
    %c0_43 = arith.constant 0 : index
    %c6_44 = arith.constant 6 : index
    %c0_45 = arith.constant 0 : index
    %65 = vector.load %arg5[%c0_43, %c6_44, %c0_45] : memref<8x8x128xf32, #tpu.memory_space<vmem>>, vector<8x1x128xf32>
    %66 = vector.shape_cast %65 : vector<8x1x128xf32> to vector<8x128xf32>
    %67 = vector.shape_cast %64 : vector<8x128xf32> to vector<8x1x128xf32>
    tpu.vector_store %arg5[%c0_43, %c6_44, %c0_45], %67 {strides = array<i32>} : memref<8x8x128xf32, #tpu.memory_space<vmem>>, vector<8x1x128xf32>,
    %c0_46 = arith.constant 0 : index
    %c7 = arith.constant 7 : index
    %c0_47 = arith.constant 0 : index
    %68 = vector.load %arg2[%c0_46, %c7, %c0_47] : memref<8x8x128xf32, #tpu.memory_space<vmem>>, vector<8x1x128xf32>
    %69 = vector.shape_cast %68 : vector<8x1x128xf32> to vector<8x128xf32>
    %70 = arith.truncf %64 : vector<8x128xf32> to vector<8x128xbf16>
    %cst_48 = arith.constant dense<0.000000e+00> : vector<8x128xf32>
    %71 = tpu.matmul %70, %4, %cst_48 {dimension_numbers = #tpu.dot_dimension_numbers<[1], [0], [0], [1], [0, 0, 1, 1], [], []>} : vector<8x128xbf16>, vector<128x128xbf16>, vector<8x128xf32> -> vector<8x128xf32>
    %72 = arith.addf %69, %71 : vector<8x128xf32>
    %73 = math.tanh %72 : vector<8x128xf32>
    %c0_49 = arith.constant 0 : index
    %c7_50 = arith.constant 7 : index
    %c0_51 = arith.constant 0 : index
    %74 = vector.load %arg5[%c0_49, %c7_50, %c0_51] : memref<8x8x128xf32, #tpu.memory_space<vmem>>, vector<8x1x128xf32>
    %75 = vector.shape_cast %74 : vector<8x1x128xf32> to vector<8x128xf32>
    %76 = vector.shape_cast %73 : vector<8x128xf32> to vector<8x1x128xf32>
    tpu.vector_store %arg5[%c0_49, %c7_50, %c0_51], %76 {strides = array<i32>} : memref<8x8x128xf32, #tpu.memory_space<vmem>>, vector<8x1x128xf32>,
    %c0_i32_52 = arith.constant 0 : i32
    %77 = arith.cmpi eq, %arg1, %c0_i32_52 : i32
    %78 = arith.extui %77 : i1 to i32
    %c0_i32_53 = arith.constant 0 : i32
    %79 = arith.cmpi ne, %78, %c0_i32_53 : i32
    scf.if %79 {
      %c0_56 = arith.constant 0 : index
      %c0_57 = arith.constant 0 : index
      %81 = vector.load %arg6[%c0_56, %c0_57] : memref<8x128xf32, #tpu.memory_space<vmem>>, vector<8x128xf32>
      tpu.vector_store %arg6[%c0_56, %c0_57], %73 {strides = array<i32>} : memref<8x128xf32, #tpu.memory_space<vmem>>, vector<8x128xf32>,
    } else {
    }
    %c0_54 = arith.constant 0 : index
    %c0_55 = arith.constant 0 : index
    %80 = vector.load %arg7[%c0_54, %c0_55] : memref<8x128xf32, #tpu.memory_space<vmem>>, vector<8x128xf32>
    tpu.vector_store %arg7[%c0_54, %c0_55], %73 {strides = array<i32>} : memref<8x128xf32, #tpu.memory_space<vmem>>, vector<8x128xf32>,
    return
  }
  func.func @transform_0(%arg0: i32, %arg1: i32) -> (i32, i32, i32) {
    %c0_i32 = arith.constant 0 : i32
    %c0_i32_0 = arith.constant 0 : i32
    return %arg0, %arg1, %c0_i32 : i32, i32, i32
  }
  func.func @transform_1(%arg0: i32, %arg1: i32) -> (i32, i32) {
    %c0_i32 = arith.constant 0 : i32
    %c0_i32_0 = arith.constant 0 : i32
    return %arg0, %c0_i32 : i32, i32
  }
  func.func @transform_2(%arg0: i32, %arg1: i32) -> (i32, i32) {
    %c0_i32 = arith.constant 0 : i32
    %c0_i32_0 = arith.constant 0 : i32
    %c0_i32_1 = arith.constant 0 : i32
    return %c0_i32, %c0_i32_0 : i32, i32
  }
  func.func @transform_3(%arg0: i32, %arg1: i32) -> (i32, i32, i32) {
    %c0_i32 = arith.constant 0 : i32
    %c0_i32_0 = arith.constant 0 : i32
    return %arg0, %arg1, %c0_i32 : i32, i32, i32
  }
  func.func @transform_4(%arg0: i32, %arg1: i32) -> (i32, i32) {
    %c0_i32 = arith.constant 0 : i32
    %c0_i32_0 = arith.constant 0 : i32
    return %arg0, %c0_i32 : i32, i32
  }
}

module attributes {stable_mosaic.version = 11 : i64} {
  func.func @_matmul_bias_kernel(%arg0: i32, %arg1: i32, %arg2: memref<64x128xf32, #tpu.memory_space<vmem>>, %arg3: memref<128x128xbf16, #tpu.memory_space<vmem>>, %arg4: memref<1x128xf32, #tpu.memory_space<vmem>>, %arg5: memref<64x128xf32, #tpu.memory_space<vmem>>) attributes {dimension_semantics = [#tpu.dimension_semantics<parallel>, #tpu.dimension_semantics<parallel>], iteration_bounds = array<i64: 1, 1>, scalar_prefetch = 0 : i64, scratch_operands = 0 : i64, tpu.core_type = #tpu.core_type<tc>, window_params = [{transform_indices = @transform_0, window_bounds = array<i64: 64, 128>}, {transform_indices = @transform_1, window_bounds = array<i64: 128, 128>}, {transform_indices = @transform_2, window_bounds = array<i64: 1, 128>}, {transform_indices = @transform_3, window_bounds = array<i64: 64, 128>}]} {
    %c0 = arith.constant 0 : index
    %c0_0 = arith.constant 0 : index
    %0 = vector.load %arg2[%c0, %c0_0] : memref<64x128xf32, #tpu.memory_space<vmem>>, vector<64x128xf32>
    %1 = arith.truncf %0 : vector<64x128xf32> to vector<64x128xbf16>
    %c0_1 = arith.constant 0 : index
    %c0_2 = arith.constant 0 : index
    %2 = vector.load %arg3[%c0_1, %c0_2] : memref<128x128xbf16, #tpu.memory_space<vmem>>, vector<128x128xbf16>
    %cst = arith.constant dense<0.000000e+00> : vector<64x128xf32>
    %3 = tpu.matmul %1, %2, %cst {dimension_numbers = #tpu.dot_dimension_numbers<[1], [0], [0], [1], [0, 0, 1, 1], [], []>} : vector<64x128xbf16>, vector<128x128xbf16>, vector<64x128xf32> -> vector<64x128xf32>
    %c0_3 = arith.constant 0 : index
    %c0_4 = arith.constant 0 : index
    %4 = vector.load %arg4[%c0_3, %c0_4] : memref<1x128xf32, #tpu.memory_space<vmem>>, vector<1x128xf32>
    %5 = vector.broadcast %4 : vector<1x128xf32> to vector<64x128xf32>
    %6 = arith.addf %3, %5 : vector<64x128xf32>
    %c0_5 = arith.constant 0 : index
    %c0_6 = arith.constant 0 : index
    %7 = vector.load %arg5[%c0_5, %c0_6] : memref<64x128xf32, #tpu.memory_space<vmem>>, vector<64x128xf32>
    tpu.vector_store %arg5[%c0_5, %c0_6], %6 {strides = array<i32>} : memref<64x128xf32, #tpu.memory_space<vmem>>, vector<64x128xf32>,
    return
  }
  func.func @transform_0(%arg0: i32, %arg1: i32) -> (i32, i32) {
    %c0_i32 = arith.constant 0 : i32
    %c0_i32_0 = arith.constant 0 : i32
    return %arg1, %c0_i32 : i32, i32
  }
  func.func @transform_1(%arg0: i32, %arg1: i32) -> (i32, i32) {
    %c0_i32 = arith.constant 0 : i32
    %c0_i32_0 = arith.constant 0 : i32
    return %c0_i32, %arg0 : i32, i32
  }
  func.func @transform_2(%arg0: i32, %arg1: i32) -> (i32, i32) {
    %c0_i32 = arith.constant 0 : i32
    %c0_i32_0 = arith.constant 0 : i32
    return %c0_i32, %arg0 : i32, i32
  }
  func.func @transform_3(%arg0: i32, %arg1: i32) -> (i32, i32) {
    %c0_i32 = arith.constant 0 : i32
    return %arg1, %arg0 : i32, i32
  }
}

</mosaic_0001>

<bundles_post_ra>
// kernel: decoder_forward.5
= control target key start
LH: loop header
LB: loop body
LE: loop exit
PB: predicated region body
PF: predicated region fallthrough
CT: control target
= control target key end

     0   :  { %s339_s1 = inlined_call_operand.vmem [shape: bf16[128,128], index: 1, kind: input, shape index: {}]   ;;  %s340_s0 = inlined_call_operand.vmem [shape: f32[64,128], index: 0, kind: input, shape index: {}]   ;;  %s341_s2 = inlined_call_operand.vmem [shape: f32[1,128], index: 2, kind: input, shape index: {}]   ;;  %s342_s3 = inlined_call_operand.vmem [shape: f32[64,128], index: 3, kind: output, shape index: {}]  }
   0x1   :  { %v236_v0 = vld [vmem:[%s339_s1] sm:$0xff]   ;;  %v237_v1 = vld [vmem:[%s339_s1 + $0x8] sm:$0xff]   ;;  %v238_v2 = vld [vmem:[%s339_s1 + $0x10] sm:$0xff]  }
   0x2   :  { %196 = vmatprep.subr.bf16.mxu0 %v236_v0  ;;  %220 = vmatprep.subr.bf16.mxu1 %v236_v0  ;;  %v239_v3 = vld [vmem:[%s339_s1 + $0x18] sm:$0xff]   ;;  %v15_v4 = vld [vmem:[%s340_s0] sm:$0xff]  ;;  %v16_v5 = vld [vmem:[%s340_s0 + $0x8] sm:$0xff] }
   0x3   :  { %197 = vmatpush3.bf16.msra.mxu0 %v236_v0  ;;  %228 = vmatpush3.bf16.msra.mxu1 %v236_v0  ;;  %v19_v6 = vld [vmem:[%s340_s0 + $0x20] sm:$0xff]  ;;  %v23_v7 = vpack.c.bf16 %v16_v5, %v15_v4  ;;  %v20_v8 = vld [vmem:[%s340_s0 + $0x28] sm:$0xff]  ;;  %v242_v12 = vld [vmem:[%s339_s1 + $0x30] sm:$0xff]  }
   0x4   :  { %198 = vmatprep.subr.bf16.mxu0 %v237_v1  ;;  %221 = vmatprep.subr.bf16.mxu1 %v237_v1  ;;  %v25_v9 = vpack.c.bf16 %v20_v8, %v19_v6  ;;  %v240_v10 = vld [vmem:[%s339_s1 + $0x20] sm:$0xff]   ;;  %v241_v11 = vld [vmem:[%s339_s1 + $0x28] sm:$0xff]   ;;  %v243_v13 = vld [vmem:[%s339_s1 + $0x38] sm:$0xff]  }
   0x5   :  { %212 = vmatprep.mubr.bf16.mxu0 %v23_v7  ;;  %v17_v14 = vld [vmem:[%s340_s0 + $0x10] sm:$0xff]  ;;  %v18_v15 = vld [vmem:[%s340_s0 + $0x18] sm:$0xff]  ;;  %v175_v20 = vld [vmem:[%s341_s2] ss:$0 sm:$0xff] }
   0x6   :  { %216 = vmatprep.mubr.bf16.mxu1 %v25_v9  ;;  %v21_v16 = vld [vmem:[%s340_s0 + $0x30] sm:$0xff]  ;;  %v22_v17 = vld [vmem:[%s340_s0 + $0x38] sm:$0xff]  ;;  %v24_v18 = vpack.c.bf16 %v18_v15, %v17_v14 }
   0x7   :  { %199 = vmatpush3.bf16.msra.mxu0 %v237_v1  ;;  %229 = vmatpush3.bf16.msra.mxu1 %v237_v1  ;;  %v26_v19 = vpack.c.bf16 %v22_v17, %v21_v16 }
   0x8   :  { %200 = vmatprep.subr.bf16.mxu0 %v238_v2  ;;  %222 = vmatprep.subr.bf16.mxu1 %v238_v2 }
   0xb   :  { %201 = vmatpush3.bf16.msra.mxu0 %v238_v2  ;;  %230 = vmatpush3.bf16.msra.mxu1 %v238_v2 }
   0xc   :  { %202 = vmatprep.subr.bf16.mxu0 %v239_v3  ;;  %223 = vmatprep.subr.bf16.mxu1 %v239_v3 }
   0xf   :  { %203 = vmatpush3.bf16.msra.mxu0 %v239_v3  ;;  %231 = vmatpush3.bf16.msra.mxu1 %v239_v3 }
  0x10   :  { %204 = vmatprep.subr.bf16.mxu0 %v240_v10  ;;  %224 = vmatprep.subr.bf16.mxu1 %v240_v10 }
  0x13   :  { %205 = vmatpush3.bf16.msra.mxu0 %v240_v10  ;;  %232 = vmatpush3.bf16.msra.mxu1 %v240_v10 }
  0x14   :  { %206 = vmatprep.subr.bf16.mxu0 %v241_v11  ;;  %225 = vmatprep.subr.bf16.mxu1 %v241_v11 }
  0x17   :  { %207 = vmatpush3.bf16.msra.mxu0 %v241_v11  ;;  %233 = vmatpush3.bf16.msra.mxu1 %v241_v11 }
  0x18   :  { %208 = vmatprep.subr.bf16.mxu0 %v242_v12  ;;  %226 = vmatprep.subr.bf16.mxu1 %v242_v12 }
  0x1b   :  { %209 = vmatpush3.bf16.msra.mxu0 %v242_v12  ;;  %234 = vmatpush3.bf16.msra.mxu1 %v242_v12 }
  0x1c   :  { %210 = vmatprep.subr.bf16.mxu0 %v243_v13  ;;  %227 = vmatprep.subr.bf16.mxu1 %v243_v13 }
  0x1f   :  { %211 = vmatpush3.bf16.msra.mxu0 %v243_v13  ;;  %235 = vmatpush3.bf16.msra.mxu1 %v243_v13 }
  0x22   :  { %213 = vmatmul.mubr.bf16.vlgmr.msra.gmra.mrb[0].mxu0 %v24_v18  ;;  %217 = vmatmul.mubr.bf16.vlgmr.msra.gmra.mrb[0].mxu1 %v26_v19 }
  0xf5   :  { %v214_v21 = vpop.f32.mrb[0].mxu0  ;;  %v218_v22 = vpop.f32.mrb[0].mxu1 }
  0xf6   :  { %v141_v23 = vadd.f32 %v214_v21, %v175_v20  ;;  %v157_v24 = vadd.f32 %v218_v22, %v175_v20  ;;  %v132_v25 = vpop.f32.mrb[1].mxu0  ;;  %v148_v26 = vpop.f32.mrb[1].mxu1 }
  0xf7   :  { %v133_v27 = vadd.f32 %v175_v20, %v132_v25  ;;  %v149_v28 = vadd.f32 %v175_v20, %v148_v26  ;;  %v215_v29 = vpop.f32.mrb[2].mxu0  ;;  %v219_v30 = vpop.f32.mrb[2].mxu1 }
  0xf8   :  { %165 = vst [vmem:[%s342_s3 + $0x10] sm:$0xff] %v141_v23  ;;  %169 = vst [vmem:[%s342_s3 + $0x30] sm:$0xff] %v157_v24  ;;  %v144_v31 = vadd.f32 %v215_v29, %v175_v20  ;;  %v160_v32 = vadd.f32 %v219_v30, %v175_v20  ;;  %v135_v33 = vpop.f32.mrb[3].mxu0  ;;  %v151_v34 = vpop.f32.mrb[3].mxu1 }
  0xf9   :  { %163 = vst [vmem:[%s342_s3] sm:$0xff] %v133_v27  ;;  %167 = vst [vmem:[%s342_s3 + $0x20] sm:$0xff] %v149_v28  ;;  %v136_v35 = vadd.f32 %v175_v20, %v135_v33  ;;  %v152_v36 = vadd.f32 %v175_v20, %v151_v34 }
  0xfa   :  { %166 = vst [vmem:[%s342_s3 + $0x18] sm:$0xff] %v144_v31  ;;  %170 = vst [vmem:[%s342_s3 + $0x38] sm:$0xff] %v160_v32 }
  0xfb   :  { %164 = vst [vmem:[%s342_s3 + $0x8] sm:$0xff] %v136_v35  ;;  %168 = vst [vmem:[%s342_s3 + $0x28] sm:$0xff] %v152_v36 }

// kernel: decoder_forward.3
= control target key start
LH: loop header
LB: loop body
LE: loop exit
PB: predicated region body
PF: predicated region fallthrough
CT: control target
= control target key end

     0   :  { %s355_s1 = inlined_call_operand.vmem [shape: bf16[128,128], index: 1, kind: input, shape index: {}]   ;;  %s356_s0 = inlined_call_operand.vmem [shape: bf16[64,128], index: 0, kind: input, shape index: {}]   ;;  %s357_s2 = inlined_call_operand.vmem [shape: f32[1,128], index: 2, kind: input, shape index: {}]   ;;  %s358_s3 = inlined_call_operand.vmem [shape: f32[64,128], index: 3, kind: output, shape index: {}]  }
   0x1   :  { %v260_v0 = vld [vmem:[%s355_s1] sm:$0xff]   ;;  %v261_v1 = vld [vmem:[%s355_s1 + $0x8] sm:$0xff]   ;;  %v262_v2 = vld [vmem:[%s355_s1 + $0x10] sm:$0xff]  }
   0x2   :  { %220 = vmatprep.subr.bf16.mxu0 %v260_v0  ;;  %244 = vmatprep.subr.bf16.mxu1 %v260_v0  ;;  %v263_v3 = vld [vmem:[%s355_s1 + $0x18] sm:$0xff]   ;;  %v268_v4 = vld [vmem:[%s356_s0] sm:$0xff]   ;;  %v269_v5 = vld [vmem:[%s356_s0 + $0x10] sm:$0xff]  }
   0x3   :  { %221 = vmatpush3.bf16.msra.mxu0 %v260_v0  ;;  %252 = vmatpush3.bf16.msra.mxu1 %v260_v0  ;;  %v264_v6 = vld [vmem:[%s355_s1 + $0x20] sm:$0xff]   ;;  %v265_v7 = vld [vmem:[%s355_s1 + $0x28] sm:$0xff]   ;;  %v266_v8 = vld [vmem:[%s355_s1 + $0x30] sm:$0xff]  }
   0x4   :  { %222 = vmatprep.subr.bf16.mxu0 %v261_v1  ;;  %245 = vmatprep.subr.bf16.mxu1 %v261_v1  ;;  %v267_v9 = vld [vmem:[%s355_s1 + $0x38] sm:$0xff]   ;;  %v270_v10 = vld [vmem:[%s356_s0 + $0x8] sm:$0xff]   ;;  %v195_v12 = vld [vmem:[%s357_s2] ss:$0 sm:$0xff] }
   0x5   :  { %236 = vmatprep.mubr.bf16.mxu0 %v268_v4  ;;  %240 = vmatprep.mubr.bf16.mxu1 %v269_v5  ;;  %v271_v11 = vld [vmem:[%s356_s0 + $0x18] sm:$0xff]  }
   0x7   :  { %223 = vmatpush3.bf16.msra.mxu0 %v261_v1  ;;  %253 = vmatpush3.bf16.msra.mxu1 %v261_v1 }
   0x8   :  { %224 = vmatprep.subr.bf16.mxu0 %v262_v2  ;;  %246 = vmatprep.subr.bf16.mxu1 %v262_v2 }
   0xb   :  { %225 = vmatpush3.bf16.msra.mxu0 %v262_v2  ;;  %254 = vmatpush3.bf16.msra.mxu1 %v262_v2 }
   0xc   :  { %226 = vmatprep.subr.bf16.mxu0 %v263_v3  ;;  %247 = vmatprep.subr.bf16.mxu1 %v263_v3 }
   0xf   :  { %227 = vmatpush3.bf16.msra.mxu0 %v263_v3  ;;  %255 = vmatpush3.bf16.msra.mxu1 %v263_v3 }
  0x10   :  { %228 = vmatprep.subr.bf16.mxu0 %v264_v6  ;;  %248 = vmatprep.subr.bf16.mxu1 %v264_v6 }
  0x13   :  { %229 = vmatpush3.bf16.msra.mxu0 %v264_v6  ;;  %256 = vmatpush3.bf16.msra.mxu1 %v264_v6 }
  0x14   :  { %230 = vmatprep.subr.bf16.mxu0 %v265_v7  ;;  %249 = vmatprep.subr.bf16.mxu1 %v265_v7 }
  0x17   :  { %231 = vmatpush3.bf16.msra.mxu0 %v265_v7  ;;  %257 = vmatpush3.bf16.msra.mxu1 %v265_v7 }
  0x18   :  { %232 = vmatprep.subr.bf16.mxu0 %v266_v8  ;;  %250 = vmatprep.subr.bf16.mxu1 %v266_v8 }
  0x1b   :  { %233 = vmatpush3.bf16.msra.mxu0 %v266_v8  ;;  %258 = vmatpush3.bf16.msra.mxu1 %v266_v8 }
  0x1c   :  { %234 = vmatprep.subr.bf16.mxu0 %v267_v9  ;;  %251 = vmatprep.subr.bf16.mxu1 %v267_v9 }
  0x1f   :  { %235 = vmatpush3.bf16.msra.mxu0 %v267_v9  ;;  %259 = vmatpush3.bf16.msra.mxu1 %v267_v9 }
  0x22   :  { %237 = vmatmul.mubr.bf16.vlgmr.msra.gmra.mrb[0].mxu0 %v270_v10  ;;  %241 = vmatmul.mubr.bf16.vlgmr.msra.gmra.mrb[0].mxu1 %v271_v11 }
  0xf5   :  { %v238_v13 = vpop.f32.mrb[0].mxu0  ;;  %v242_v14 = vpop.f32.mrb[0].mxu1 }
  0xf6   :  { %v161_v15 = vadd.f32 %v238_v13, %v195_v12  ;;  %v177_v16 = vadd.f32 %v242_v14, %v195_v12  ;;  %v152_v17 = vpop.f32.mrb[1].mxu0  ;;  %v168_v18 = vpop.f32.mrb[1].mxu1 }
  0xf7   :  { %v153_v19 = vadd.f32 %v195_v12, %v152_v17  ;;  %v169_v20 = vadd.f32 %v195_v12, %v168_v18  ;;  %v239_v21 = vpop.f32.mrb[2].mxu0  ;;  %v243_v22 = vpop.f32.mrb[2].mxu1 }
  0xf8   :  { %185 = vst [vmem:[%s358_s3 + $0x10] sm:$0xff] %v161_v15  ;;  %189 = vst [vmem:[%s358_s3 + $0x30] sm:$0xff] %v177_v16  ;;  %v164_v23 = vadd.f32 %v239_v21, %v195_v12  ;;  %v180_v24 = vadd.f32 %v243_v22, %v195_v12  ;;  %v155_v25 = vpop.f32.mrb[3].mxu0  ;;  %v171_v26 = vpop.f32.mrb[3].mxu1 }
  0xf9   :  { %183 = vst [vmem:[%s358_s3] sm:$0xff] %v153_v19  ;;  %187 = vst [vmem:[%s358_s3 + $0x20] sm:$0xff] %v169_v20  ;;  %v156_v27 = vadd.f32 %v195_v12, %v155_v25  ;;  %v172_v28 = vadd.f32 %v195_v12, %v171_v26 }
  0xfa   :  { %186 = vst [vmem:[%s358_s3 + $0x18] sm:$0xff] %v164_v23  ;;  %190 = vst [vmem:[%s358_s3 + $0x38] sm:$0xff] %v180_v24 }
  0xfb   :  { %184 = vst [vmem:[%s358_s3 + $0x8] sm:$0xff] %v156_v27  ;;  %188 = vst [vmem:[%s358_s3 + $0x28] sm:$0xff] %v172_v28 }

// kernel: decoder_forward.4
= control target key start
LH: loop header
LB: loop body
LE: loop exit
PB: predicated region body
PF: predicated region fallthrough
CT: control target
= control target key end

     0   :  { %v1525_v0 = vmov 0.0   ;;  %vm1526_vm0 = vmmov 0   ;;  %vm210_vm1 = vcmask 1041409   ;;  %vm213_vm2 = vcmask 1042434   ;;  %s2198_s2 = inlined_call_operand.vmem [shape: bf16[128,128], index: 2, kind: input, shape index: {}]   ;;  %s2199_s1 = inlined_call_operand.vmem [shape: f32[8,128], index: 1, kind: input, shape index: {}]   ;;  %s2200_s0 = inlined_call_operand.vmem [shape: f32[8,8,128], index: 0, kind: input, shape index: {}]   ;;  %s2201_s3 = inlined_call_operand.vmem [shape: f32[8,8,128], index: 3, kind: output, shape index: {0}]   ;;  %s2202_s4 = inlined_call_operand.vmem [shape: f32[8,128], index: 4, kind: output, shape index: {1}]  }
   0x1   :  { %1219 = vmatprep.subr.bf16.mxu0 %v1525_v0  ;;  %v1556_v1 = vld [vmem:[%s2198_s2] sm:$0xff]   ;;  %1235 = vmatprep.mubr.msk.bf16.mxu0 %vm1526_vm0, %v1525_v0  ;;  %v1567_v2 = vld [vmem:[%s2198_s2 + $0x8] sm:$0xff]   ;;  %v1576_v3 = vld [vmem:[%s2198_s2 + $0x10] sm:$0xff]   ;;  %vm216_vm3 = vcmask 1043459   ;;  %vm219_vm4 = vcmask 1044484   ;;  %vm222_vm5 = vcmask 1045509  }
   0x2   :  { %1239 = vmatprep.subr.bf16.mxu1 %v1525_v0  ;;  %1255 = vmatprep.mubr.msk.bf16.mxu1 %vm1526_vm0, %v1525_v0  ;;  %v1585_v4 = vld [vmem:[%s2198_s2 + $0x18] sm:$0xff]   ;;  %v1594_v5 = vld [vmem:[%s2198_s2 + $0x20] sm:$0xff]   ;;  %v1603_v6 = vld [vmem:[%s2198_s2 + $0x28] sm:$0xff]   ;;  %vm225_vm6 = vcmask 1046534   ;;  %vm228_vm7 = vcmask 1047559  }
   0x3   :  { %1220 = vmatpush3.bf16.msra.mxu0 %v1556_v1  ;;  %1240 = vmatpush3.bf16.msra.mxu1 %v1556_v1  ;;  %v1612_v7 = vld [vmem:[%s2198_s2 + $0x30] sm:$0xff]   ;;  %v1621_v8 = vld [vmem:[%s2198_s2 + $0x38] sm:$0xff]   ;;  %v21_v9 = vld [vmem:[%s2199_s1] sm:$0xff] }
   0x4   :  { %1221 = vmatprep.subr.bf16.mxu0 %v1525_v0  ;;  %1241 = vmatprep.subr.bf16.mxu1 %v1525_v0  ;;  %v48_v10 = vpack.c.bf16 %v21_v9, %v21_v9  ;;  %v40_v11 = vld [vmem:[%s2200_s0] sm:$0x1]  ;;  %v41_v12 = vld [vmem:[%s2200_s0 + $0x8] sm:$0x1]  ;;  %v42_v13 = vld [vmem:[%s2200_s0 + $0x10] sm:$0x1] }
   0x5   :  { %v43_v14 = vld [vmem:[%s2200_s0 + $0x18] sm:$0x1]  ;;  %v44_v15 = vld [vmem:[%s2200_s0 + $0x20] sm:$0x1]  ;;  %v45_v22 = vld [vmem:[%s2200_s0 + $0x28] sm:$0x1] }
   0x6   :  { %v46_v27 = vld [vmem:[%s2200_s0 + $0x30] sm:$0x1]  ;;  %v47_v34 = vld [vmem:[%s2200_s0 + $0x38] sm:$0x1] }
   0x7   :  { %1222 = vmatpush3.bf16.msra.mxu0 %v1567_v2  ;;  %1242 = vmatpush3.bf16.msra.mxu1 %v1567_v2 }
   0x8   :  { %1223 = vmatprep.subr.bf16.mxu0 %v1525_v0  ;;  %1243 = vmatprep.subr.bf16.mxu1 %v1525_v0 }
   0xb   :  { %1224 = vmatpush3.bf16.msra.mxu0 %v1576_v3  ;;  %1244 = vmatpush3.bf16.msra.mxu1 %v1576_v3 }
   0xc   :  { %1225 = vmatprep.subr.bf16.mxu0 %v1525_v0  ;;  %1245 = vmatprep.subr.bf16.mxu1 %v1525_v0 }
   0xf   :  { %1226 = vmatpush3.bf16.msra.mxu0 %v1585_v4  ;;  %1246 = vmatpush3.bf16.msra.mxu1 %v1585_v4 }
  0x10   :  { %1227 = vmatprep.subr.bf16.mxu0 %v1525_v0  ;;  %1247 = vmatprep.subr.bf16.mxu1 %v1525_v0 }
  0x13   :  { %1228 = vmatpush3.bf16.msra.mxu0 %v1594_v5  ;;  %1248 = vmatpush3.bf16.msra.mxu1 %v1594_v5 }
  0x14   :  { %1229 = vmatprep.subr.bf16.mxu0 %v1525_v0  ;;  %1249 = vmatprep.subr.bf16.mxu1 %v1525_v0 }
  0x17   :  { %1230 = vmatpush3.bf16.msra.mxu0 %v1603_v6  ;;  %1250 = vmatpush3.bf16.msra.mxu1 %v1603_v6 }
  0x18   :  { %1231 = vmatprep.subr.bf16.mxu0 %v1525_v0  ;;  %1251 = vmatprep.subr.bf16.mxu1 %v1525_v0 }
  0x1b   :  { %1232 = vmatpush3.bf16.msra.mxu0 %v1612_v7  ;;  %1252 = vmatpush3.bf16.msra.mxu1 %v1612_v7 }
  0x1c   :  { %1233 = vmatprep.subr.bf16.mxu0 %v1525_v0  ;;  %1253 = vmatprep.subr.bf16.mxu1 %v1525_v0 }
  0x1f   :  { %1234 = vmatpush3.bf16.msra.mxu0 %v1621_v8  ;;  %1254 = vmatpush3.bf16.msra.mxu1 %v1621_v8 }
  0x20   :  { %1259 = vmatprep.subr.bf16.mxu0 %v1525_v0  ;;  %1279 = vmatprep.subr.bf16.mxu1 %v1525_v0 }
  0x22   :  { %1236 = vmatmul.mubr.bf16.vlgmr.msra.gmra.mrb[0].mxu0 %v48_v10 }
  0x23   :  { %1260 = vmatpush3.bf16.msra.mxu0 %v1556_v1  ;;  %1275 = vmatprep.mubr.msk.bf16.mxu0 %vm1526_vm0, %v1525_v0 }
  0x24   :  { %1261 = vmatprep.subr.bf16.mxu0 %v1525_v0 }
  0x27   :  { %1262 = vmatpush3.bf16.msra.mxu0 %v1567_v2 }
  0x28   :  { %1263 = vmatprep.subr.bf16.mxu0 %v1525_v0 }
  0x2b   :  { %1264 = vmatpush3.bf16.msra.mxu0 %v1576_v3 }
  0x2c   :  { %1265 = vmatprep.subr.bf16.mxu0 %v1525_v0 }
  0x2f   :  { %1266 = vmatpush3.bf16.msra.mxu0 %v1585_v4 }
  0x30   :  { %1267 = vmatprep.subr.bf16.mxu0 %v1525_v0 }
  0x33   :  { %1268 = vmatpush3.bf16.msra.mxu0 %v1594_v5 }
  0x34   :  { %1269 = vmatprep.subr.bf16.mxu0 %v1525_v0 }
  0x37   :  { %1270 = vmatpush3.bf16.msra.mxu0 %v1603_v6 }
  0x38   :  { %1271 = vmatprep.subr.bf16.mxu0 %v1525_v0 }
  0x3b   :  { %1272 = vmatpush3.bf16.msra.mxu0 %v1612_v7 }
  0x3c   :  { %1273 = vmatprep.subr.bf16.mxu0 %v1525_v0 }
  0x3f   :  { %1274 = vmatpush3.bf16.msra.mxu0 %v1621_v8 }
  0x40   :  { %1299 = vmatprep.subr.bf16.mxu0 %v1525_v0 }
  0xf5   :  { %v131_v16 = vpop.f32.mrb[0].mxu0 }
  0xf6   :  { %v138_v17 = vrot.slane %v131_v16, 1  ;;  %v139_v18 = vrot.slane %v131_v16, 2  ;;  %v140_v19 = vrot.slane %v131_v16, 3  ;;  %v141_v20 = vrot.slane %v131_v16, 4  ;;  %v1237_v21 = vpop.f32.mrb[1].mxu0 }
  0xf7   :  { %v142_v23 = vrot.slane %v131_v16, 5  ;;  %v143_v24 = vrot.slane %v131_v16, 6  ;;  %v153_v25 = vadd.f32 %v131_v16, %v40_v11  ;;  %v134_v26 = vpop.f32.mrb[2].mxu0  ;;  %v144_v28 = vrot.slane %v131_v16, 7 }
  0xf8   :  { %v154_v29 = vadd.f32 %v138_v17, %v41_v12  ;;  %v155_v30 = vadd.f32 %v139_v18, %v42_v13  ;;  %v156_v31 = vadd.f32 %v140_v19, %v43_v14  ;;  %v1238_v32 = vpop.f32.mrb[3].mxu0  ;;  %v157_v33 = vadd.f32 %v141_v20, %v44_v15  ;;  %v181_v26 = vld [vmem:[%s2200_s0 + $0x21] sm:$0x1] }
  0xf9   :  { %1389 = vtanh.f32 %v153_v25  ;;  %v158_v35 = vadd.f32 %v142_v23, %v45_v22  ;;  %v159_v36 = vadd.f32 %v143_v24, %v46_v27  ;;  %v160_v37 = vadd.f32 %v144_v28, %v47_v34  ;;  %v177_v22 = vld [vmem:[%s2200_s0 + $0x1] sm:$0x1]  ;;  %v178_v23 = vld [vmem:[%s2200_s0 + $0x9] sm:$0x1]  ;;  %v179_v24 = vld [vmem:[%s2200_s0 + $0x11] sm:$0x1] }
  0xfa   :  { %1391 = vtanh.f32 %v154_v29  ;;  %v180_v25 = vld [vmem:[%s2200_s0 + $0x19] sm:$0x1] }
  0xfb   :  { %1393 = vtanh.f32 %v155_v30 }
  0xfc   :  { %1395 = vtanh.f32 %v156_v31 }
  0xfd   :  { %1397 = vtanh.f32 %v157_v33  ;;  %v182_v33 = vld [vmem:[%s2200_s0 + $0x29] sm:$0x1] }
  0xfe   :  { %1399 = vtanh.f32 %v158_v35 }
  0xff   :  { %1401 = vtanh.f32 %v159_v36 }
 0x100   :  { %1403 = vtanh.f32 %v160_v37 }
 0x103   :  { %v1390_v38 = vpop.eup %1389 }
 0x104   :  { %v1392_v39 = vpop.eup %1391  ;;  %169 = vst [vmem:[%s2201_s3] sm:$0x1] %v1390_v38  ;;  %v185_v41 = vpack.c.bf16 %v1390_v38, %v1390_v38  ;;  %v183_v38 = vld [vmem:[%s2200_s0 + $0x31] sm:$0x1] }
 0x105   :  { %v1394_v40 = vpop.eup %1393  ;;  %170 = vst [vmem:[%s2201_s3 + $0x8] sm:$0x1] %v1392_v39  ;;  %v186_v42 = vpack.c.bf16 %v1392_v39, %v1392_v39 }
 0x106   :  { %v1396_v43 = vpop.eup %1395  ;;  %171 = vst [vmem:[%s2201_s3 + $0x10] sm:$0x1] %v1394_v40  ;;  %v187_v44 = vpack.c.bf16 %v1394_v40, %v1394_v40  ;;  %v201_v53 = vunpack.c.l.b16 %v185_v41 }
 0x107   :  { %v1398_v45 = vpop.eup %1397  ;;  %172 = vst [vmem:[%s2201_s3 + $0x18] sm:$0x1] %v1396_v43  ;;  %v188_v46 = vpack.c.bf16 %v1396_v43, %v1396_v43  ;;  %v202_v47 = vunpack.c.l.b16 %v186_v42 }
 0x108   :  { %v1400_v48 = vpop.eup %1399  ;;  %173 = vst [vmem:[%s2201_s3 + $0x20] sm:$0x1] %v1398_v45  ;;  %v189_v49 = vpack.c.bf16 %v1398_v45, %v1398_v45  ;;  %v203_v50 = vunpack.c.l.b16 %v187_v44  ;;  %v184_v44 = vld [vmem:[%s2200_s0 + $0x39] sm:$0x1] }
 0x109   :  { %v1402_v51 = vpop.eup %1401  ;;  %174 = vst [vmem:[%s2201_s3 + $0x28] sm:$0x1] %v1400_v48  ;;  %v190_v52 = vpack.c.bf16 %v1400_v48, %v1400_v48  ;;  %v204_v54 = vunpack.c.l.b16 %v188_v46  ;;  %v209_v55 = vrot.slane %v202_v47, 7 }
 0x10a   :  { %v1404_v56 = vpop.eup %1403  ;;  %175 = vst [vmem:[%s2201_s3 + $0x30] sm:$0x1] %v1402_v51  ;;  %v191_v57 = vpack.c.bf16 %v1402_v51, %v1402_v51  ;;  %v205_v58 = vunpack.c.l.b16 %v189_v49  ;;  %v212_v59 = vrot.slane %v203_v50, 6 }
 0x10b   :  { %176 = vst [vmem:[%s2201_s3 + $0x38] sm:$0x1] %v1404_v56  ;;  %v192_v60 = vpack.c.bf16 %v1404_v56, %v1404_v56  ;;  %v206_v61 = vunpack.c.l.b16 %v190_v52  ;;  %v211_v62 = vsel %vm210_vm1, %v209_v55, %v201_v53  ;;  %v215_v63 = vrot.slane %v204_v54, 5 }
 0x10c   :  { %v207_v9 = vunpack.c.l.b16 %v191_v57  ;;  %v214_v10 = vsel %vm213_vm2, %v212_v59, %v211_v62  ;;  %v218_v11 = vrot.slane %v205_v58, 4 }
 0x10d   :  { %v208_v12 = vunpack.c.l.b16 %v192_v60  ;;  %v217_v13 = vsel %vm216_vm3, %v215_v63, %v214_v10  ;;  %v221_v14 = vrot.slane %v206_v61, 3 }
 0x10e   :  { %v220_v15 = vsel %vm219_vm4, %v218_v11, %v217_v13  ;;  %v224_v16 = vrot.slane %v207_v9, 2 }
 0x10f   :  { %v223_v17 = vsel %vm222_vm5, %v221_v14, %v220_v15  ;;  %v227_v18 = vrot.slane %v208_v12, 1 }
 0x110   :  { %v226_v19 = vsel %vm225_vm6, %v224_v16, %v223_v17 }
 0x111   :  { %v229_v20 = vsel %vm228_vm7, %v227_v18, %v226_v19 }
 0x112   :  { %v230_v21 = vpack.c.b16 %v229_v20, %v229_v20 }
 0x114   :  { %1256 = vmatmul.mubr.bf16.vlgmr.msra.gmra.mrb[0].mxu1 %v230_v21 }
 0x115   :  { %1280 = vmatpush3.bf16.msra.mxu1 %v1556_v1  ;;  %1295 = vmatprep.mubr.msk.bf16.mxu1 %vm1526_vm0, %v1525_v0 }
 0x116   :  { %1281 = vmatprep.subr.bf16.mxu1 %v1525_v0 }
 0x119   :  { %1282 = vmatpush3.bf16.msra.mxu1 %v1567_v2 }
 0x11a   :  { %1283 = vmatprep.subr.bf16.mxu1 %v1525_v0 }
 0x11d   :  { %1284 = vmatpush3.bf16.msra.mxu1 %v1576_v3 }
 0x11e   :  { %1285 = vmatprep.subr.bf16.mxu1 %v1525_v0 }
 0x121   :  { %1286 = vmatpush3.bf16.msra.mxu1 %v1585_v4 }
 0x122   :  { %1287 = vmatprep.subr.bf16.mxu1 %v1525_v0 }
 0x125   :  { %1288 = vmatpush3.bf16.msra.mxu1 %v1594_v5 }
 0x126   :  { %1289 = vmatprep.subr.bf16.mxu1 %v1525_v0 }
 0x129   :  { %1290 = vmatpush3.bf16.msra.mxu1 %v1603_v6 }
 0x12a   :  { %1291 = vmatprep.subr.bf16.mxu1 %v1525_v0 }
 0x12d   :  { %1292 = vmatpush3.bf16.msra.mxu1 %v1612_v7 }
 0x12e   :  { %1293 = vmatprep.subr.bf16.mxu1 %v1525_v0 }
 0x131   :  { %1294 = vmatpush3.bf16.msra.mxu1 %v1621_v8 }
 0x132   :  { %1319 = vmatprep.subr.bf16.mxu1 %v1525_v0 }
 0x1e7   :  { %v266_v27 = vpop.f32.mrb[0].mxu1 }
 0x1e8   :  { %v273_v28 = vrot.slane %v266_v27, 1  ;;  %v274_v29 = vrot.slane %v266_v27, 2  ;;  %v275_v30 = vrot.slane %v266_v27, 3  ;;  %v276_v31 = vrot.slane %v266_v27, 4  ;;  %v1257_v32 = vpop.f32.mrb[1].mxu1 }
 0x1e9   :  { %v277_v34 = vrot.slane %v266_v27, 5  ;;  %v278_v35 = vrot.slane %v266_v27, 6  ;;  %v288_v36 = vadd.f32 %v266_v27, %v177_v22  ;;  %v269_v37 = vpop.f32.mrb[2].mxu1  ;;  %v279_v39 = vrot.slane %v266_v27, 7 }
 0x1ea   :  { %v289_v40 = vadd.f32 %v273_v28, %v178_v23  ;;  %v290_v41 = vadd.f32 %v274_v29, %v179_v24  ;;  %v291_v42 = vadd.f32 %v275_v30, %v180_v25  ;;  %v1258_v43 = vpop.f32.mrb[3].mxu1  ;;  %v292_v45 = vadd.f32 %v276_v31, %v181_v26  ;;  %v316_v37 = vld [vmem:[%s2200_s0 + $0x22] sm:$0x1] }
 0x1eb   :  { %1405 = vtanh.f32 %v288_v36  ;;  %v293_v46 = vadd.f32 %v277_v34, %v182_v33  ;;  %v294_v47 = vadd.f32 %v278_v35, %v183_v38  ;;  %v295_v48 = vadd.f32 %v279_v39, %v184_v44  ;;  %v312_v33 = vld [vmem:[%s2200_s0 + $0x2] sm:$0x1]  ;;  %v313_v34 = vld [vmem:[%s2200_s0 + $0xa] sm:$0x1]  ;;  %v314_v35 = vld [vmem:[%s2200_s0 + $0x12] sm:$0x1] }
 0x1ec   :  { %1407 = vtanh.f32 %v289_v40  ;;  %v315_v36 = vld [vmem:[%s2200_s0 + $0x1a] sm:$0x1]  ;;  %v317_v44 = vld [vmem:[%s2200_s0 + $0x2a] sm:$0x1] }
 0x1ed   :  { %1409 = vtanh.f32 %v290_v41 }
 0x1ee   :  { %1411 = vtanh.f32 %v291_v42 }
 0x1ef   :  { %1413 = vtanh.f32 %v292_v45 }
 0x1f0   :  { %1415 = vtanh.f32 %v293_v46 }
 0x1f1   :  { %1417 = vtanh.f32 %v294_v47 }
 0x1f2   :  { %1419 = vtanh.f32 %v295_v48 }
 0x1f5   :  { %v1406_v49 = vpop.eup %1405 }
 0x1f6   :  { %v1408_v50 = vpop.eup %1407  ;;  %304 = vst [vmem:[%s2201_s3 + $0x1] sm:$0x1] %v1406_v49  ;;  %v320_v52 = vpack.c.bf16 %v1406_v49, %v1406_v49  ;;  %v318_v49 = vld [vmem:[%s2200_s0 + $0x32] sm:$0x1] }
 0x1f7   :  { %v1410_v51 = vpop.eup %1409  ;;  %305 = vst [vmem:[%s2201_s3 + $0x9] sm:$0x1] %v1408_v50  ;;  %v321_v53 = vpack.c.bf16 %v1408_v50, %v1408_v50 }
 0x1f8   :  { %v1412_v54 = vpop.eup %1411  ;;  %306 = vst [vmem:[%s2201_s3 + $0x11] sm:$0x1] %v1410_v51  ;;  %v322_v55 = vpack.c.bf16 %v1410_v51, %v1410_v51  ;;  %v336_v9 = vunpack.c.l.b16 %v320_v52 }
 0x1f9   :  { %v1414_v56 = vpop.eup %1413  ;;  %307 = vst [vmem:[%s2201_s3 + $0x19] sm:$0x1] %v1412_v54  ;;  %v323_v57 = vpack.c.bf16 %v1412_v54, %v1412_v54  ;;  %v337_v58 = vunpack.c.l.b16 %v321_v53 }
 0x1fa   :  { %v1416_v59 = vpop.eup %1415  ;;  %308 = vst [vmem:[%s2201_s3 + $0x21] sm:$0x1] %v1414_v56  ;;  %v324_v60 = vpack.c.bf16 %v1414_v56, %v1414_v56  ;;  %v338_v61 = vunpack.c.l.b16 %v322_v55  ;;  %v319_v55 = vld [vmem:[%s2200_s0 + $0x3a] sm:$0x1] }
 0x1fb   :  { %v1418_v62 = vpop.eup %1417  ;;  %309 = vst [vmem:[%s2201_s3 + $0x29] sm:$0x1] %v1416_v59  ;;  %v325_v63 = vpack.c.bf16 %v1416_v59, %v1416_v59  ;;  %v339_v10 = vunpack.c.l.b16 %v323_v57  ;;  %v344_v11 = vrot.slane %v337_v58, 7 }
 0x1fc   :  { %v1420_v12 = vpop.eup %1419  ;;  %310 = vst [vmem:[%s2201_s3 + $0x31] sm:$0x1] %v1418_v62  ;;  %v326_v13 = vpack.c.bf16 %v1418_v62, %v1418_v62  ;;  %v340_v14 = vunpack.c.l.b16 %v324_v60  ;;  %v346_v15 = vrot.slane %v338_v61, 6 }
 0x1fd   :  { %311 = vst [vmem:[%s2201_s3 + $0x39] sm:$0x1] %v1420_v12  ;;  %v327_v16 = vpack.c.bf16 %v1420_v12, %v1420_v12  ;;  %v341_v17 = vunpack.c.l.b16 %v325_v63  ;;  %v345_v18 = vsel %vm210_vm1, %v344_v11, %v336_v9  ;;  %v348_v19 = vrot.slane %v339_v10, 5 }
 0x1fe   :  { %v342_v20 = vunpack.c.l.b16 %v326_v13  ;;  %v347_v21 = vsel %vm213_vm2, %v346_v15, %v345_v18  ;;  %v350_v22 = vrot.slane %v340_v14, 4 }
 0x1ff   :  { %v343_v23 = vunpack.c.l.b16 %v327_v16  ;;  %v349_v24 = vsel %vm216_vm3, %v348_v19, %v347_v21  ;;  %v352_v25 = vrot.slane %v341_v17, 3 }
 0x200   :  { %v351_v26 = vsel %vm219_vm4, %v350_v22, %v349_v24  ;;  %v354_v27 = vrot.slane %v342_v20, 2 }
 0x201   :  { %v353_v28 = vsel %vm222_vm5, %v352_v25, %v351_v26  ;;  %v356_v29 = vrot.slane %v343_v23, 1 }
 0x202   :  { %v355_v30 = vsel %vm225_vm6, %v354_v27, %v353_v28 }
 0x203   :  { %v357_v31 = vsel %vm228_vm7, %v356_v29, %v355_v30 }
 0x204   :  { %v358_v32 = vpack.c.b16 %v357_v31, %v357_v31 }
 0x206   :  { %1276 = vmatmul.mubr.bf16.vlgmr.msra.gmra.mrb[4].mxu0 %v358_v32 }
 0x207   :  { %1300 = vmatpush3.bf16.msra.mxu0 %v1556_v1  ;;  %1315 = vmatprep.mubr.msk.bf16.mxu0 %vm1526_vm0, %v1525_v0 }
 0x208   :  { %1301 = vmatprep.subr.bf16.mxu0 %v1525_v0 }
 0x20b   :  { %1302 = vmatpush3.bf16.msra.mxu0 %v1567_v2 }
 0x20c   :  { %1303 = vmatprep.subr.bf16.mxu0 %v1525_v0 }
 0x20f   :  { %1304 = vmatpush3.bf16.msra.mxu0 %v1576_v3 }
 0x210   :  { %1305 = vmatprep.subr.bf16.mxu0 %v1525_v0 }
 0x213   :  { %1306 = vmatpush3.bf16.msra.mxu0 %v1585_v4 }
 0x214   :  { %1307 = vmatprep.subr.bf16.mxu0 %v1525_v0 }
 0x217   :  { %1308 = vmatpush3.bf16.msra.mxu0 %v1594_v5 }
 0x218   :  { %1309 = vmatprep.subr.bf16.mxu0 %v1525_v0 }
 0x21b   :  { %1310 = vmatpush3.bf16.msra.mxu0 %v1603_v6 }
 0x21c   :  { %1311 = vmatprep.subr.bf16.mxu0 %v1525_v0 }
 0x21f   :  { %1312 = vmatpush3.bf16.msra.mxu0 %v1612_v7 }
 0x220   :  { %1313 = vmatprep.subr.bf16.mxu0 %v1525_v0 }
 0x223   :  { %1314 = vmatpush3.bf16.msra.mxu0 %v1621_v8 }
 0x224   :  { %1339 = vmatprep.subr.bf16.mxu0 %v1525_v0 }
 0x2d9   :  { %v394_v38 = vpop.f32.mrb[4].mxu0 }
 0x2da   :  { %v401_v39 = vrot.slane %v394_v38, 1  ;;  %v402_v40 = vrot.slane %v394_v38, 2  ;;  %v403_v41 = vrot.slane %v394_v38, 3  ;;  %v404_v42 = vrot.slane %v394_v38, 4  ;;  %v1277_v43 = vpop.f32.mrb[5].mxu0 }
 0x2db   :  { %v405_v45 = vrot.slane %v394_v38, 5  ;;  %v406_v46 = vrot.slane %v394_v38, 6  ;;  %v416_v47 = vadd.f32 %v394_v38, %v312_v33  ;;  %v397_v48 = vpop.f32.mrb[6].mxu0  ;;  %v407_v50 = vrot.slane %v394_v38, 7 }
 0x2dc   :  { %v417_v51 = vadd.f32 %v401_v39, %v313_v34  ;;  %v418_v52 = vadd.f32 %v402_v40, %v314_v35  ;;  %v419_v53 = vadd.f32 %v403_v41, %v315_v36  ;;  %v1278_v54 = vpop.f32.mrb[7].mxu0  ;;  %v420_v56 = vadd.f32 %v404_v42, %v316_v37  ;;  %v444_v48 = vld [vmem:[%s2200_s0 + $0x23] sm:$0x1] }
 0x2dd   :  { %1421 = vtanh.f32 %v416_v47  ;;  %v421_v57 = vadd.f32 %v405_v45, %v317_v44  ;;  %v422_v58 = vadd.f32 %v406_v46, %v318_v49  ;;  %v423_v59 = vadd.f32 %v407_v50, %v319_v55  ;;  %v440_v44 = vld [vmem:[%s2200_s0 + $0x3] sm:$0x1]  ;;  %v441_v45 = vld [vmem:[%s2200_s0 + $0xb] sm:$0x1]  ;;  %v442_v46 = vld [vmem:[%s2200_s0 + $0x13] sm:$0x1] }
 0x2de   :  { %1423 = vtanh.f32 %v417_v51  ;;  %v443_v47 = vld [vmem:[%s2200_s0 + $0x1b] sm:$0x1]  ;;  %v445_v55 = vld [vmem:[%s2200_s0 + $0x2b] sm:$0x1] }
 0x2df   :  { %1425 = vtanh.f32 %v418_v52 }
 0x2e0   :  { %1427 = vtanh.f32 %v419_v53 }
 0x2e1   :  { %1429 = vtanh.f32 %v420_v56 }
 0x2e2   :  { %1431 = vtanh.f32 %v421_v57 }
 0x2e3   :  { %1433 = vtanh.f32 %v422_v58 }
 0x2e4   :  { %1435 = vtanh.f32 %v423_v59 }
 0x2e7   :  { %v1422_v60 = vpop.eup %1421 }
 0x2e8   :  { %v1424_v61 = vpop.eup %1423  ;;  %432 = vst [vmem:[%s2201_s3 + $0x2] sm:$0x1] %v1422_v60  ;;  %v448_v63 = vpack.c.bf16 %v1422_v60, %v1422_v60  ;;  %v446_v60 = vld [vmem:[%s2200_s0 + $0x33] sm:$0x1] }
 0x2e9   :  { %v1426_v62 = vpop.eup %1425  ;;  %433 = vst [vmem:[%s2201_s3 + $0xa] sm:$0x1] %v1424_v61  ;;  %v449_v9 = vpack.c.bf16 %v1424_v61, %v1424_v61 }
 0x2ea   :  { %v1428_v10 = vpop.eup %1427  ;;  %434 = vst [vmem:[%s2201_s3 + $0x12] sm:$0x1] %v1426_v62  ;;  %v450_v11 = vpack.c.bf16 %v1426_v62, %v1426_v62  ;;  %v464_v20 = vunpack.c.l.b16 %v448_v63 }
 0x2eb   :  { %v1430_v12 = vpop.eup %1429  ;;  %435 = vst [vmem:[%s2201_s3 + $0x1a] sm:$0x1] %v1428_v10  ;;  %v451_v13 = vpack.c.bf16 %v1428_v10, %v1428_v10  ;;  %v465_v14 = vunpack.c.l.b16 %v449_v9 }
 0x2ec   :  { %v1432_v15 = vpop.eup %1431  ;;  %436 = vst [vmem:[%s2201_s3 + $0x22] sm:$0x1] %v1430_v12  ;;  %v452_v16 = vpack.c.bf16 %v1430_v12, %v1430_v12  ;;  %v466_v17 = vunpack.c.l.b16 %v450_v11  ;;  %v447_v11 = vld [vmem:[%s2200_s0 + $0x3b] sm:$0x1] }
 0x2ed   :  { %v1434_v18 = vpop.eup %1433  ;;  %437 = vst [vmem:[%s2201_s3 + $0x2a] sm:$0x1] %v1432_v15  ;;  %v453_v19 = vpack.c.bf16 %v1432_v15, %v1432_v15  ;;  %v467_v21 = vunpack.c.l.b16 %v451_v13  ;;  %v472_v22 = vrot.slane %v465_v14, 7 }
 0x2ee   :  { %v1436_v23 = vpop.eup %1435  ;;  %438 = vst [vmem:[%s2201_s3 + $0x32] sm:$0x1] %v1434_v18  ;;  %v454_v24 = vpack.c.bf16 %v1434_v18, %v1434_v18  ;;  %v468_v25 = vunpack.c.l.b16 %v452_v16  ;;  %v474_v26 = vrot.slane %v466_v17, 6 }
 0x2ef   :  { %439 = vst [vmem:[%s2201_s3 + $0x3a] sm:$0x1] %v1436_v23  ;;  %v455_v27 = vpack.c.bf16 %v1436_v23, %v1436_v23  ;;  %v469_v28 = vunpack.c.l.b16 %v453_v19  ;;  %v473_v29 = vsel %vm210_vm1, %v472_v22, %v464_v20  ;;  %v476_v30 = vrot.slane %v467_v21, 5 }
 0x2f0   :  { %v470_v31 = vunpack.c.l.b16 %v454_v24  ;;  %v475_v32 = vsel %vm213_vm2, %v474_v26, %v473_v29  ;;  %v478_v33 = vrot.slane %v468_v25, 4 }
 0x2f1   :  { %v471_v34 = vunpack.c.l.b16 %v455_v27  ;;  %v477_v35 = vsel %vm216_vm3, %v476_v30, %v475_v32  ;;  %v480_v36 = vrot.slane %v469_v28, 3 }
 0x2f2   :  { %v479_v37 = vsel %vm219_vm4, %v478_v33, %v477_v35  ;;  %v482_v38 = vrot.slane %v470_v31, 2 }
 0x2f3   :  { %v481_v39 = vsel %vm222_vm5, %v480_v36, %v479_v37  ;;  %v484_v40 = vrot.slane %v471_v34, 1 }
 0x2f4   :  { %v483_v41 = vsel %vm225_vm6, %v482_v38, %v481_v39 }
 0x2f5   :  { %v485_v42 = vsel %vm228_vm7, %v484_v40, %v483_v41 }
 0x2f6   :  { %v486_v43 = vpack.c.b16 %v485_v42, %v485_v42 }
 0x2f8   :  { %1296 = vmatmul.mubr.bf16.vlgmr.msra.gmra.mrb[4].mxu1 %v486_v43 }
 0x2f9   :  { %1320 = vmatpush3.bf16.msra.mxu1 %v1556_v1  ;;  %1335 = vmatprep.mubr.msk.bf16.mxu1 %vm1526_vm0, %v1525_v0 }
 0x2fa   :  { %1321 = vmatprep.subr.bf16.mxu1 %v1525_v0 }
 0x2fd   :  { %1322 = vmatpush3.bf16.msra.mxu1 %v1567_v2 }
 0x2fe   :  { %1323 = vmatprep.subr.bf16.mxu1 %v1525_v0 }
 0x301   :  { %1324 = vmatpush3.bf16.msra.mxu1 %v1576_v3 }
 0x302   :  { %1325 = vmatprep.subr.bf16.mxu1 %v1525_v0 }
 0x305   :  { %1326 = vmatpush3.bf16.msra.mxu1 %v1585_v4 }
 0x306   :  { %1327 = vmatprep.subr.bf16.mxu1 %v1525_v0 }
 0x309   :  { %1328 = vmatpush3.bf16.msra.mxu1 %v1594_v5 }
 0x30a   :  { %1329 = vmatprep.subr.bf16.mxu1 %v1525_v0 }
 0x30d   :  { %1330 = vmatpush3.bf16.msra.mxu1 %v1603_v6 }
 0x30e   :  { %1331 = vmatprep.subr.bf16.mxu1 %v1525_v0 }
 0x311   :  { %1332 = vmatpush3.bf16.msra.mxu1 %v1612_v7 }
 0x312   :  { %1333 = vmatprep.subr.bf16.mxu1 %v1525_v0 }
 0x315   :  { %1334 = vmatpush3.bf16.msra.mxu1 %v1621_v8 }
 0x316   :  { %1359 = vmatprep.subr.bf16.mxu1 %v1525_v0 }
 0x3cb   :  { %v522_v49 = vpop.f32.mrb[4].mxu1 }
 0x3cc   :  { %v529_v50 = vrot.slane %v522_v49, 1  ;;  %v530_v51 = vrot.slane %v522_v49, 2  ;;  %v531_v52 = vrot.slane %v522_v49, 3  ;;  %v532_v53 = vrot.slane %v522_v49, 4  ;;  %v1297_v54 = vpop.f32.mrb[5].mxu1 }
 0x3cd   :  { %v533_v56 = vrot.slane %v522_v49, 5  ;;  %v534_v57 = vrot.slane %v522_v49, 6  ;;  %v544_v58 = vadd.f32 %v522_v49, %v440_v44  ;;  %v525_v59 = vpop.f32.mrb[6].mxu1  ;;  %v535_v61 = vrot.slane %v522_v49, 7 }
 0x3ce   :  { %v545_v62 = vadd.f32 %v529_v50, %v441_v45  ;;  %v546_v63 = vadd.f32 %v530_v51, %v442_v46  ;;  %v547_v9 = vadd.f32 %v531_v52, %v443_v47  ;;  %v1298_v10 = vpop.f32.mrb[7].mxu1  ;;  %v548_v12 = vadd.f32 %v532_v53, %v444_v48 }
 0x3cf   :  { %1437 = vtanh.f32 %v544_v58  ;;  %v549_v13 = vadd.f32 %v533_v56, %v445_v55  ;;  %v550_v14 = vadd.f32 %v534_v57, %v446_v60  ;;  %v551_v15 = vadd.f32 %v535_v61, %v447_v11  ;;  %v573_v58 = vld [vmem:[%s2200_s0 + $0x2c] sm:$0x1] }
 0x3d0   :  { %1439 = vtanh.f32 %v545_v62 }
 0x3d1   :  { %1441 = vtanh.f32 %v546_v63  ;;  %v574_v63 = vld [vmem:[%s2200_s0 + $0x34] sm:$0x1] }
 0x3d2   :  { %1443 = vtanh.f32 %v547_v9 }
 0x3d3   :  { %1445 = vtanh.f32 %v548_v12 }
 0x3d4   :  { %1447 = vtanh.f32 %v549_v13 }
 0x3d5   :  { %1449 = vtanh.f32 %v550_v14  ;;  %v575_v14 = vld [vmem:[%s2200_s0 + $0x3c] sm:$0x1] }
 0x3d6   :  { %1451 = vtanh.f32 %v551_v15 }
 0x3d9   :  { %v1438_v16 = vpop.eup %1437 }
 0x3da   :  { %v1440_v17 = vpop.eup %1439  ;;  %560 = vst [vmem:[%s2201_s3 + $0x3] sm:$0x1] %v1438_v16  ;;  %v576_v19 = vpack.c.bf16 %v1438_v16, %v1438_v16 }
 0x3db   :  { %v1442_v18 = vpop.eup %1441  ;;  %561 = vst [vmem:[%s2201_s3 + $0xb] sm:$0x1] %v1440_v17  ;;  %v577_v20 = vpack.c.bf16 %v1440_v17, %v1440_v17 }
 0x3dc   :  { %v1444_v21 = vpop.eup %1443  ;;  %562 = vst [vmem:[%s2201_s3 + $0x13] sm:$0x1] %v1442_v18  ;;  %v578_v22 = vpack.c.bf16 %v1442_v18, %v1442_v18  ;;  %v592_v31 = vunpack.c.l.b16 %v576_v19 }
 0x3dd   :  { %v1446_v23 = vpop.eup %1445  ;;  %563 = vst [vmem:[%s2201_s3 + $0x1b] sm:$0x1] %v1444_v21  ;;  %v579_v24 = vpack.c.bf16 %v1444_v21, %v1444_v21  ;;  %v593_v25 = vunpack.c.l.b16 %v577_v20 }
 0x3de   :  { %v1448_v26 = vpop.eup %1447  ;;  %564 = vst [vmem:[%s2201_s3 + $0x23] sm:$0x1] %v1446_v23  ;;  %v580_v27 = vpack.c.bf16 %v1446_v23, %v1446_v23  ;;  %v594_v28 = vunpack.c.l.b16 %v578_v22 }
 0x3df   :  { %v1450_v29 = vpop.eup %1449  ;;  %565 = vst [vmem:[%s2201_s3 + $0x2b] sm:$0x1] %v1448_v26  ;;  %v581_v30 = vpack.c.bf16 %v1448_v26, %v1448_v26  ;;  %v595_v32 = vunpack.c.l.b16 %v579_v24  ;;  %v600_v33 = vrot.slane %v593_v25, 7 }
 0x3e0   :  { %v1452_v34 = vpop.eup %1451  ;;  %566 = vst [vmem:[%s2201_s3 + $0x33] sm:$0x1] %v1450_v29  ;;  %v582_v35 = vpack.c.bf16 %v1450_v29, %v1450_v29  ;;  %v596_v36 = vunpack.c.l.b16 %v580_v27  ;;  %v602_v37 = vrot.slane %v594_v28, 6 }
 0x3e1   :  { %567 = vst [vmem:[%s2201_s3 + $0x3b] sm:$0x1] %v1452_v34  ;;  %v583_v38 = vpack.c.bf16 %v1452_v34, %v1452_v34  ;;  %v597_v39 = vunpack.c.l.b16 %v581_v30  ;;  %v601_v40 = vsel %vm210_vm1, %v600_v33, %v592_v31  ;;  %v604_v41 = vrot.slane %v595_v32, 5 }
 0x3e2   :  { %v598_v42 = vunpack.c.l.b16 %v582_v35  ;;  %v603_v43 = vsel %vm213_vm2, %v602_v37, %v601_v40  ;;  %v606_v44 = vrot.slane %v596_v36, 4 }
 0x3e3   :  { %v599_v45 = vunpack.c.l.b16 %v583_v38  ;;  %v605_v46 = vsel %vm216_vm3, %v604_v41, %v603_v43  ;;  %v608_v47 = vrot.slane %v597_v39, 3 }
 0x3e4   :  { %v607_v48 = vsel %vm219_vm4, %v606_v44, %v605_v46  ;;  %v610_v49 = vrot.slane %v598_v42, 2 }
 0x3e5   :  { %v609_v50 = vsel %vm222_vm5, %v608_v47, %v607_v48  ;;  %v612_v51 = vrot.slane %v599_v45, 1 }
 0x3e6   :  { %v611_v52 = vsel %vm225_vm6, %v610_v49, %v609_v50 }
 0x3e7   :  { %v613_v53 = vsel %vm228_vm7, %v612_v51, %v611_v52 }
 0x3e8   :  { %v614_v54 = vpack.c.b16 %v613_v53, %v613_v53 }
 0x3ea   :  { %1316 = vmatmul.mubr.bf16.vlgmr.msra.gmra.mrb[8].mxu0 %v614_v54 }
 0x3eb   :  { %1340 = vmatpush3.bf16.msra.mxu0 %v1556_v1  ;;  %1355 = vmatprep.mubr.msk.bf16.mxu0 %vm1526_vm0, %v1525_v0  ;;  %v568_v1 = vld [vmem:[%s2200_s0 + $0x4] sm:$0x1] }
 0x3ec   :  { %1341 = vmatprep.subr.bf16.mxu0 %v1525_v0 }
 0x3ef   :  { %1342 = vmatpush3.bf16.msra.mxu0 %v1567_v2  ;;  %v569_v2 = vld [vmem:[%s2200_s0 + $0xc] sm:$0x1] }
 0x3f0   :  { %1343 = vmatprep.subr.bf16.mxu0 %v1525_v0 }
 0x3f3   :  { %1344 = vmatpush3.bf16.msra.mxu0 %v1576_v3  ;;  %v570_v3 = vld [vmem:[%s2200_s0 + $0x14] sm:$0x1] }
 0x3f4   :  { %1345 = vmatprep.subr.bf16.mxu0 %v1525_v0 }
 0x3f7   :  { %1346 = vmatpush3.bf16.msra.mxu0 %v1585_v4  ;;  %v571_v4 = vld [vmem:[%s2200_s0 + $0x1c] sm:$0x1] }
 0x3f8   :  { %1347 = vmatprep.subr.bf16.mxu0 %v1525_v0 }
 0x3fb   :  { %1348 = vmatpush3.bf16.msra.mxu0 %v1594_v5  ;;  %v572_v5 = vld [vmem:[%s2200_s0 + $0x24] sm:$0x1] }
 0x3fc   :  { %1349 = vmatprep.subr.bf16.mxu0 %v1525_v0 }
 0x3ff   :  { %1350 = vmatpush3.bf16.msra.mxu0 %v1603_v6 }
 0x400   :  { %1351 = vmatprep.subr.bf16.mxu0 %v1525_v0 }
 0x403   :  { %1352 = vmatpush3.bf16.msra.mxu0 %v1612_v7 }
 0x404   :  { %1353 = vmatprep.subr.bf16.mxu0 %v1525_v0 }
 0x407   :  { %1354 = vmatpush3.bf16.msra.mxu0 %v1621_v8 }
 0x4bd   :  { %v650_v6 = vpop.f32.mrb[8].mxu0 }
 0x4be   :  { %v657_v7 = vrot.slane %v650_v6, 1  ;;  %v658_v8 = vrot.slane %v650_v6, 2  ;;  %v659_v55 = vrot.slane %v650_v6, 3  ;;  %v660_v56 = vrot.slane %v650_v6, 4  ;;  %v1317_v57 = vpop.f32.mrb[9].mxu0 }
 0x4bf   :  { %v661_v59 = vrot.slane %v650_v6, 5  ;;  %v662_v60 = vrot.slane %v650_v6, 6  ;;  %v672_v61 = vadd.f32 %v650_v6, %v568_v1  ;;  %v653_v62 = vpop.f32.mrb[10].mxu0  ;;  %v663_v9 = vrot.slane %v650_v6, 7  ;;  %v1519_v6 = vld [vmem:[%s2198_s2 + $0x10] sm:$0xff]   ;;  %v1524_v57 = vld [vmem:[%s2198_s2 + $0x38] sm:$0xff]  }
 0x4c0   :  { %v673_v10 = vadd.f32 %v657_v7, %v569_v2  ;;  %v674_v11 = vadd.f32 %v658_v8, %v570_v3  ;;  %v675_v12 = vadd.f32 %v659_v55, %v571_v4  ;;  %v1318_v13 = vpop.f32.mrb[11].mxu0  ;;  %v676_v15 = vadd.f32 %v660_v56, %v572_v5  ;;  %v1517_v4 = vld [vmem:[%s2198_s2] sm:$0xff]   ;;  %v1518_v5 = vld [vmem:[%s2198_s2 + $0x8] sm:$0xff]   ;;  %v1520_v7 = vld [vmem:[%s2198_s2 + $0x18] sm:$0xff]  }
 0x4c1   :  { %1453 = vtanh.f32 %v672_v61  ;;  %v677_v16 = vadd.f32 %v661_v59, %v573_v58  ;;  %v678_v17 = vadd.f32 %v662_v60, %v574_v63  ;;  %v679_v18 = vadd.f32 %v663_v9, %v575_v14  ;;  %v1521_v8 = vld [vmem:[%s2198_s2 + $0x20] sm:$0xff]   ;;  %v1522_v55 = vld [vmem:[%s2198_s2 + $0x28] sm:$0xff]   ;;  %v1523_v56 = vld [vmem:[%s2198_s2 + $0x30] sm:$0xff]  }
 0x4c2   :  { %1455 = vtanh.f32 %v673_v10  ;;  %v696_v58 = vld [vmem:[%s2200_s0 + $0x5] sm:$0x1]  ;;  %v697_v59 = vld [vmem:[%s2200_s0 + $0xd] sm:$0x1]  ;;  %v698_v60 = vld [vmem:[%s2200_s0 + $0x15] sm:$0x1] }
 0x4c3   :  { %1457 = vtanh.f32 %v674_v11  ;;  %v700_v61 = vld [vmem:[%s2200_s0 + $0x25] sm:$0x1]  ;;  %v701_v13 = vld [vmem:[%s2200_s0 + $0x2d] sm:$0x1] }
 0x4c4   :  { %1459 = vtanh.f32 %v675_v12 }
 0x4c5   :  { %1461 = vtanh.f32 %v676_v15 }
 0x4c6   :  { %1463 = vtanh.f32 %v677_v16 }
 0x4c7   :  { %1465 = vtanh.f32 %v678_v17 }
 0x4c8   :  { %1467 = vtanh.f32 %v679_v18  ;;  %v702_v18 = vld [vmem:[%s2200_s0 + $0x35] sm:$0x1] }
 0x4cb   :  { %v1454_v19 = vpop.eup %1453 }
 0x4cc   :  { %v1456_v20 = vpop.eup %1455  ;;  %688 = vst [vmem:[%s2201_s3 + $0x4] sm:$0x1] %v1454_v19  ;;  %v704_v22 = vpack.c.bf16 %v1454_v19, %v1454_v19 }
 0x4cd   :  { %v1458_v21 = vpop.eup %1457  ;;  %689 = vst [vmem:[%s2201_s3 + $0xc] sm:$0x1] %v1456_v20  ;;  %v705_v23 = vpack.c.bf16 %v1456_v20, %v1456_v20 }
 0x4ce   :  { %v1460_v24 = vpop.eup %1459  ;;  %690 = vst [vmem:[%s2201_s3 + $0x14] sm:$0x1] %v1458_v21  ;;  %v706_v25 = vpack.c.bf16 %v1458_v21, %v1458_v21  ;;  %v720_v34 = vunpack.c.l.b16 %v704_v22 }
 0x4cf   :  { %v1462_v26 = vpop.eup %1461  ;;  %691 = vst [vmem:[%s2201_s3 + $0x1c] sm:$0x1] %v1460_v24  ;;  %v707_v27 = vpack.c.bf16 %v1460_v24, %v1460_v24  ;;  %v721_v28 = vunpack.c.l.b16 %v705_v23  ;;  %v703_v24 = vld [vmem:[%s2200_s0 + $0x3d] sm:$0x1] }
 0x4d0   :  { %v1464_v29 = vpop.eup %1463  ;;  %692 = vst [vmem:[%s2201_s3 + $0x24] sm:$0x1] %v1462_v26  ;;  %v708_v30 = vpack.c.bf16 %v1462_v26, %v1462_v26  ;;  %v722_v31 = vunpack.c.l.b16 %v706_v25 }
 0x4d1   :  { %v1466_v32 = vpop.eup %1465  ;;  %693 = vst [vmem:[%s2201_s3 + $0x2c] sm:$0x1] %v1464_v29  ;;  %v709_v33 = vpack.c.bf16 %v1464_v29, %v1464_v29  ;;  %v723_v35 = vunpack.c.l.b16 %v707_v27  ;;  %v728_v36 = vrot.slane %v721_v28, 7 }
 0x4d2   :  { %v1468_v37 = vpop.eup %1467  ;;  %694 = vst [vmem:[%s2201_s3 + $0x34] sm:$0x1] %v1466_v32  ;;  %v710_v38 = vpack.c.bf16 %v1466_v32, %v1466_v32  ;;  %v724_v39 = vunpack.c.l.b16 %v708_v30  ;;  %v730_v40 = vrot.slane %v722_v31, 6 }
 0x4d3   :  { %695 = vst [vmem:[%s2201_s3 + $0x3c] sm:$0x1] %v1468_v37  ;;  %v711_v41 = vpack.c.bf16 %v1468_v37, %v1468_v37  ;;  %v725_v42 = vunpack.c.l.b16 %v709_v33  ;;  %v729_v43 = vsel %vm210_vm1, %v728_v36, %v720_v34  ;;  %v732_v44 = vrot.slane %v723_v35, 5 }
 0x4d4   :  { %v726_v45 = vunpack.c.l.b16 %v710_v38  ;;  %v731_v46 = vsel %vm213_vm2, %v730_v40, %v729_v43  ;;  %v734_v47 = vrot.slane %v724_v39, 4 }
 0x4d5   :  { %v727_v48 = vunpack.c.l.b16 %v711_v41  ;;  %v733_v49 = vsel %vm216_vm3, %v732_v44, %v731_v46  ;;  %v736_v50 = vrot.slane %v725_v42, 3 }
 0x4d6   :  { %v735_v51 = vsel %vm219_vm4, %v734_v47, %v733_v49  ;;  %v738_v52 = vrot.slane %v726_v45, 2 }
 0x4d7   :  { %v737_v53 = vsel %vm222_vm5, %v736_v50, %v735_v51  ;;  %v740_v54 = vrot.slane %v727_v48, 1 }
 0x4d8   :  { %v739_v1 = vsel %vm225_vm6, %v738_v52, %v737_v53 }
 0x4d9   :  { %v741_v2 = vsel %vm228_vm7, %v740_v54, %v739_v1 }
 0x4da   :  { %v742_v3 = vpack.c.b16 %v741_v2, %v741_v2 }
 0x4dc   :  { %1336 = vmatmul.mubr.bf16.vlgmr.msra.gmra.mrb[8].mxu1 %v742_v3 }
 0x4dd   :  { %1360 = vmatpush3.bf16.msra.mxu1 %v1517_v4  ;;  %1375 = vmatprep.mubr.msk.bf16.mxu1 %vm1526_vm0, %v1525_v0 }
 0x4de   :  { %1361 = vmatprep.subr.bf16.mxu1 %v1525_v0 }
 0x4e1   :  { %1362 = vmatpush3.bf16.msra.mxu1 %v1518_v5 }
 0x4e2   :  { %1363 = vmatprep.subr.bf16.mxu1 %v1525_v0 }
 0x4e5   :  { %1364 = vmatpush3.bf16.msra.mxu1 %v1519_v6 }
 0x4e6   :  { %1365 = vmatprep.subr.bf16.mxu1 %v1525_v0 }
 0x4e9   :  { %1366 = vmatpush3.bf16.msra.mxu1 %v1520_v7 }
 0x4ea   :  { %1367 = vmatprep.subr.bf16.mxu1 %v1525_v0 }
 0x4ed   :  { %1368 = vmatpush3.bf16.msra.mxu1 %v1521_v8 }
 0x4ee   :  { %1369 = vmatprep.subr.bf16.mxu1 %v1525_v0 }
 0x4f1   :  { %1370 = vmatpush3.bf16.msra.mxu1 %v1522_v55 }
 0x4f2   :  { %1371 = vmatprep.subr.bf16.mxu1 %v1525_v0 }
 0x4f5   :  { %1372 = vmatpush3.bf16.msra.mxu1 %v1523_v56 }
 0x4f6   :  { %1373 = vmatprep.subr.bf16.mxu1 %v1525_v0  ;;  %v699_v0 = vld [vmem:[%s2200_s0 + $0x1d] sm:$0x1] }
 0x4f9   :  { %1374 = vmatpush3.bf16.msra.mxu1 %v1524_v57 }
 0x5af   :  { %v778_v62 = vpop.f32.mrb[8].mxu1 }
 0x5b0   :  { %v785_v63 = vrot.slane %v778_v62, 1  ;;  %v786_v9 = vrot.slane %v778_v62, 2  ;;  %v787_v10 = vrot.slane %v778_v62, 3  ;;  %v788_v11 = vrot.slane %v778_v62, 4  ;;  %v1337_v12 = vpop.f32.mrb[9].mxu1 }
 0x5b1   :  { %v789_v14 = vrot.slane %v778_v62, 5  ;;  %v790_v15 = vrot.slane %v778_v62, 6  ;;  %v800_v16 = vadd.f32 %v778_v62, %v696_v58  ;;  %v781_v17 = vpop.f32.mrb[10].mxu1  ;;  %v791_v19 = vrot.slane %v778_v62, 7  ;;  %v827_v62 = vld [vmem:[%s2200_s0 + $0x1e] sm:$0x1] }
 0x5b2   :  { %v801_v20 = vadd.f32 %v785_v63, %v697_v59  ;;  %v802_v21 = vadd.f32 %v786_v9, %v698_v60  ;;  %v803_v22 = vadd.f32 %v787_v10, %v699_v0  ;;  %v1338_v23 = vpop.f32.mrb[11].mxu1  ;;  %v804_v25 = vadd.f32 %v788_v11, %v700_v61  ;;  %v824_v60 = vld [vmem:[%s2200_s0 + $0x6] sm:$0x1]  ;;  %v825_v0 = vld [vmem:[%s2200_s0 + $0xe] sm:$0x1] }
 0x5b3   :  { %1469 = vtanh.f32 %v800_v16  ;;  %v805_v26 = vadd.f32 %v789_v14, %v701_v13  ;;  %v806_v27 = vadd.f32 %v790_v15, %v702_v18  ;;  %v807_v28 = vadd.f32 %v791_v19, %v703_v24  ;;  %v826_v61 = vld [vmem:[%s2200_s0 + $0x16] sm:$0x1]  ;;  %v828_v63 = vld [vmem:[%s2200_s0 + $0x26] sm:$0x1]  ;;  %v829_v15 = vld [vmem:[%s2200_s0 + $0x2e] sm:$0x1] }
 0x5b4   :  { %1471 = vtanh.f32 %v801_v20  ;;  %v830_v20 = vld [vmem:[%s2200_s0 + $0x36] sm:$0x1] }
 0x5b5   :  { %1473 = vtanh.f32 %v802_v21 }
 0x5b6   :  { %1475 = vtanh.f32 %v803_v22 }
 0x5b7   :  { %1477 = vtanh.f32 %v804_v25 }
 0x5b8   :  { %1479 = vtanh.f32 %v805_v26  ;;  %v831_v26 = vld [vmem:[%s2200_s0 + $0x3e] sm:$0x1] }
 0x5b9   :  { %1481 = vtanh.f32 %v806_v27 }
 0x5ba   :  { %1483 = vtanh.f32 %v807_v28 }
 0x5bd   :  { %v1470_v29 = vpop.eup %1469 }
 0x5be   :  { %v1472_v30 = vpop.eup %1471  ;;  %816 = vst [vmem:[%s2201_s3 + $0x5] sm:$0x1] %v1470_v29  ;;  %v832_v32 = vpack.c.bf16 %v1470_v29, %v1470_v29 }
 0x5bf   :  { %v1474_v31 = vpop.eup %1473  ;;  %817 = vst [vmem:[%s2201_s3 + $0xd] sm:$0x1] %v1472_v30  ;;  %v833_v33 = vpack.c.bf16 %v1472_v30, %v1472_v30 }
 0x5c0   :  { %v1476_v34 = vpop.eup %1475  ;;  %818 = vst [vmem:[%s2201_s3 + $0x15] sm:$0x1] %v1474_v31  ;;  %v834_v35 = vpack.c.bf16 %v1474_v31, %v1474_v31  ;;  %v848_v44 = vunpack.c.l.b16 %v832_v32 }
 0x5c1   :  { %v1478_v36 = vpop.eup %1477  ;;  %819 = vst [vmem:[%s2201_s3 + $0x1d] sm:$0x1] %v1476_v34  ;;  %v835_v37 = vpack.c.bf16 %v1476_v34, %v1476_v34  ;;  %v849_v38 = vunpack.c.l.b16 %v833_v33 }
 0x5c2   :  { %v1480_v39 = vpop.eup %1479  ;;  %820 = vst [vmem:[%s2201_s3 + $0x25] sm:$0x1] %v1478_v36  ;;  %v836_v40 = vpack.c.bf16 %v1478_v36, %v1478_v36  ;;  %v850_v41 = vunpack.c.l.b16 %v834_v35 }
 0x5c3   :  { %v1482_v42 = vpop.eup %1481  ;;  %821 = vst [vmem:[%s2201_s3 + $0x2d] sm:$0x1] %v1480_v39  ;;  %v837_v43 = vpack.c.bf16 %v1480_v39, %v1480_v39  ;;  %v851_v45 = vunpack.c.l.b16 %v835_v37  ;;  %v856_v46 = vrot.slane %v849_v38, 7 }
 0x5c4   :  { %v1484_v47 = vpop.eup %1483  ;;  %822 = vst [vmem:[%s2201_s3 + $0x35] sm:$0x1] %v1482_v42  ;;  %v838_v48 = vpack.c.bf16 %v1482_v42, %v1482_v42  ;;  %v852_v49 = vunpack.c.l.b16 %v836_v40  ;;  %v858_v50 = vrot.slane %v850_v41, 6 }
 0x5c5   :  { %823 = vst [vmem:[%s2201_s3 + $0x3d] sm:$0x1] %v1484_v47  ;;  %v839_v51 = vpack.c.bf16 %v1484_v47, %v1484_v47  ;;  %v853_v52 = vunpack.c.l.b16 %v837_v43  ;;  %v857_v53 = vsel %vm210_vm1, %v856_v46, %v848_v44  ;;  %v860_v54 = vrot.slane %v851_v45, 5 }
 0x5c6   :  { %v854_v1 = vunpack.c.l.b16 %v838_v48  ;;  %v859_v2 = vsel %vm213_vm2, %v858_v50, %v857_v53  ;;  %v862_v3 = vrot.slane %v852_v49, 4 }
 0x5c7   :  { %v855_v4 = vunpack.c.l.b16 %v839_v51  ;;  %v861_v5 = vsel %vm216_vm3, %v860_v54, %v859_v2  ;;  %v864_v6 = vrot.slane %v853_v52, 3 }
 0x5c8   :  { %v863_v7 = vsel %vm219_vm4, %v862_v3, %v861_v5  ;;  %v866_v8 = vrot.slane %v854_v1, 2 }
 0x5c9   :  { %v865_v55 = vsel %vm222_vm5, %v864_v6, %v863_v7  ;;  %v868_v56 = vrot.slane %v855_v4, 1 }
 0x5ca   :  { %v867_v57 = vsel %vm225_vm6, %v866_v8, %v865_v55 }
 0x5cb   :  { %v869_v58 = vsel %vm228_vm7, %v868_v56, %v867_v57 }
 0x5cc   :  { %v870_v59 = vpack.c.b16 %v869_v58, %v869_v58 }
 0x5ce   :  { %1356 = vmatmul.mubr.bf16.vlgmr.msra.gmra.mrb[12].mxu0 %v870_v59 }
 0x6a1   :  { %v906_v9 = vpop.f32.mrb[12].mxu0 }
 0x6a2   :  { %v913_v10 = vrot.slane %v906_v9, 1  ;;  %v914_v11 = vrot.slane %v906_v9, 2  ;;  %v915_v12 = vrot.slane %v906_v9, 3  ;;  %v916_v13 = vrot.slane %v906_v9, 4  ;;  %v1357_v14 = vpop.f32.mrb[13].mxu0 }
 0x6a3   :  { %v917_v16 = vrot.slane %v906_v9, 5  ;;  %v918_v17 = vrot.slane %v906_v9, 6  ;;  %v928_v18 = vadd.f32 %v906_v9, %v824_v60  ;;  %v909_v19 = vpop.f32.mrb[14].mxu0  ;;  %v919_v21 = vrot.slane %v906_v9, 7  ;;  %v955_v9 = vld [vmem:[%s2200_s0 + $0x1f] sm:$0x1] }
 0x6a4   :  { %v929_v22 = vadd.f32 %v913_v10, %v825_v0  ;;  %v930_v23 = vadd.f32 %v914_v11, %v826_v61  ;;  %v931_v24 = vadd.f32 %v915_v12, %v827_v62  ;;  %v1358_v25 = vpop.f32.mrb[15].mxu0  ;;  %v932_v27 = vadd.f32 %v916_v13, %v828_v63  ;;  %v952_v61 = vld [vmem:[%s2200_s0 + $0x7] sm:$0x1]  ;;  %v953_v62 = vld [vmem:[%s2200_s0 + $0xf] sm:$0x1] }
 0x6a5   :  { %1485 = vtanh.f32 %v928_v18  ;;  %v933_v28 = vadd.f32 %v917_v16, %v829_v15  ;;  %v934_v29 = vadd.f32 %v918_v17, %v830_v20  ;;  %v935_v30 = vadd.f32 %v919_v21, %v831_v26  ;;  %v954_v63 = vld [vmem:[%s2200_s0 + $0x17] sm:$0x1]  ;;  %v956_v10 = vld [vmem:[%s2200_s0 + $0x27] sm:$0x1]  ;;  %v957_v17 = vld [vmem:[%s2200_s0 + $0x2f] sm:$0x1] }
 0x6a6   :  { %1487 = vtanh.f32 %v929_v22  ;;  %v958_v22 = vld [vmem:[%s2200_s0 + $0x37] sm:$0x1] }
 0x6a7   :  { %1489 = vtanh.f32 %v930_v23 }
 0x6a8   :  { %1491 = vtanh.f32 %v931_v24 }
 0x6a9   :  { %1493 = vtanh.f32 %v932_v27 }
 0x6aa   :  { %1495 = vtanh.f32 %v933_v28  ;;  %v959_v28 = vld [vmem:[%s2200_s0 + $0x3f] sm:$0x1] }
 0x6ab   :  { %1497 = vtanh.f32 %v934_v29 }
 0x6ac   :  { %1499 = vtanh.f32 %v935_v30 }
 0x6af   :  { %v1486_v31 = vpop.eup %1485 }
 0x6b0   :  { %v1488_v32 = vpop.eup %1487  ;;  %944 = vst [vmem:[%s2201_s3 + $0x6] sm:$0x1] %v1486_v31  ;;  %v960_v34 = vpack.c.bf16 %v1486_v31, %v1486_v31 }
 0x6b1   :  { %v1490_v33 = vpop.eup %1489  ;;  %945 = vst [vmem:[%s2201_s3 + $0xe] sm:$0x1] %v1488_v32  ;;  %v961_v35 = vpack.c.bf16 %v1488_v32, %v1488_v32 }
 0x6b2   :  { %v1492_v36 = vpop.eup %1491  ;;  %946 = vst [vmem:[%s2201_s3 + $0x16] sm:$0x1] %v1490_v33  ;;  %v962_v37 = vpack.c.bf16 %v1490_v33, %v1490_v33  ;;  %v976_v46 = vunpack.c.l.b16 %v960_v34 }
 0x6b3   :  { %v1494_v38 = vpop.eup %1493  ;;  %947 = vst [vmem:[%s2201_s3 + $0x1e] sm:$0x1] %v1492_v36  ;;  %v963_v39 = vpack.c.bf16 %v1492_v36, %v1492_v36  ;;  %v977_v40 = vunpack.c.l.b16 %v961_v35 }
 0x6b4   :  { %v1496_v41 = vpop.eup %1495  ;;  %948 = vst [vmem:[%s2201_s3 + $0x26] sm:$0x1] %v1494_v38  ;;  %v964_v42 = vpack.c.bf16 %v1494_v38, %v1494_v38  ;;  %v978_v43 = vunpack.c.l.b16 %v962_v37 }
 0x6b5   :  { %v1498_v44 = vpop.eup %1497  ;;  %949 = vst [vmem:[%s2201_s3 + $0x2e] sm:$0x1] %v1496_v41  ;;  %v965_v45 = vpack.c.bf16 %v1496_v41, %v1496_v41  ;;  %v979_v47 = vunpack.c.l.b16 %v963_v39  ;;  %v984_v48 = vrot.slane %v977_v40, 7 }
 0x6b6   :  { %v1500_v49 = vpop.eup %1499  ;;  %950 = vst [vmem:[%s2201_s3 + $0x36] sm:$0x1] %v1498_v44  ;;  %v966_v50 = vpack.c.bf16 %v1498_v44, %v1498_v44  ;;  %v980_v51 = vunpack.c.l.b16 %v964_v42  ;;  %v986_v52 = vrot.slane %v978_v43, 6 }
 0x6b7   :  { %951 = vst [vmem:[%s2201_s3 + $0x3e] sm:$0x1] %v1500_v49  ;;  %v967_v53 = vpack.c.bf16 %v1500_v49, %v1500_v49  ;;  %v981_v54 = vunpack.c.l.b16 %v965_v45  ;;  %v985_v1 = vsel %vm210_vm1, %v984_v48, %v976_v46  ;;  %v988_v2 = vrot.slane %v979_v47, 5 }
 0x6b8   :  { %v982_v3 = vunpack.c.l.b16 %v966_v50  ;;  %v987_v4 = vsel %vm213_vm2, %v986_v52, %v985_v1  ;;  %v990_v5 = vrot.slane %v980_v51, 4 }
 0x6b9   :  { %v983_v6 = vunpack.c.l.b16 %v967_v53  ;;  %v989_v7 = vsel %vm216_vm3, %v988_v2, %v987_v4  ;;  %v992_v8 = vrot.slane %v981_v54, 3 }
 0x6ba   :  { %v991_v55 = vsel %vm219_vm4, %v990_v5, %v989_v7  ;;  %v994_v56 = vrot.slane %v982_v3, 2 }
 0x6bb   :  { %v993_v57 = vsel %vm222_vm5, %v992_v8, %v991_v55  ;;  %v996_v58 = vrot.slane %v983_v6, 1 }
 0x6bc   :  { %v995_v59 = vsel %vm225_vm6, %v994_v56, %v993_v57 }
 0x6bd   :  { %v997_v60 = vsel %vm228_vm7, %v996_v58, %v995_v59 }
 0x6be   :  { %v998_v0 = vpack.c.b16 %v997_v60, %v997_v60 }
 0x6c0   :  { %1376 = vmatmul.mubr.bf16.vlgmr.msra.gmra.mrb[12].mxu1 %v998_v0 }
 0x793   :  { %v1034_v11 = vpop.f32.mrb[12].mxu1 }
 0x794   :  { %v1041_v12 = vrot.slane %v1034_v11, 1  ;;  %v1042_v13 = vrot.slane %v1034_v11, 2  ;;  %v1043_v14 = vrot.slane %v1034_v11, 3  ;;  %v1044_v15 = vrot.slane %v1034_v11, 4  ;;  %v1377_v16 = vpop.f32.mrb[13].mxu1 }
 0x795   :  { %v1045_v18 = vrot.slane %v1034_v11, 5  ;;  %v1046_v19 = vrot.slane %v1034_v11, 6  ;;  %v1056_v20 = vadd.f32 %v1034_v11, %v952_v61  ;;  %v1037_v21 = vpop.f32.mrb[14].mxu1  ;;  %v1047_v23 = vrot.slane %v1034_v11, 7 }
 0x796   :  { %v1057_v24 = vadd.f32 %v1041_v12, %v953_v62  ;;  %v1058_v25 = vadd.f32 %v1042_v13, %v954_v63  ;;  %v1059_v26 = vadd.f32 %v1043_v14, %v955_v9  ;;  %v1378_v27 = vpop.f32.mrb[15].mxu1  ;;  %v1060_v29 = vadd.f32 %v1044_v15, %v956_v10 }
 0x797   :  { %1501 = vtanh.f32 %v1056_v20  ;;  %v1061_v30 = vadd.f32 %v1045_v18, %v957_v17  ;;  %v1062_v31 = vadd.f32 %v1046_v19, %v958_v22  ;;  %v1063_v32 = vadd.f32 %v1047_v23, %v959_v28 }
 0x798   :  { %1503 = vtanh.f32 %v1057_v24 }
 0x799   :  { %1505 = vtanh.f32 %v1058_v25 }
 0x79a   :  { %1507 = vtanh.f32 %v1059_v26 }
 0x79b   :  { %1509 = vtanh.f32 %v1060_v29 }
 0x79c   :  { %1511 = vtanh.f32 %v1061_v30 }
 0x79d   :  { %1513 = vtanh.f32 %v1062_v31 }
 0x79e   :  { %1515 = vtanh.f32 %v1063_v32 }
 0x7a1   :  { %v1502_v33 = vpop.eup %1501 }
 0x7a2   :  { %v1504_v34 = vpop.eup %1503  ;;  %1072 = vst [vmem:[%s2201_s3 + $0x7] sm:$0x1] %v1502_v33 }
 0x7a3   :  { %v1506_v35 = vpop.eup %1505  ;;  %1073 = vst [vmem:[%s2201_s3 + $0xf] sm:$0x1] %v1504_v34  ;;  %v1091_v36 = vrot.slane %v1504_v34, 7 }
 0x7a4   :  { %v1508_v37 = vpop.eup %1507  ;;  %1074 = vst [vmem:[%s2201_s3 + $0x17] sm:$0x1] %v1506_v35  ;;  %v1093_v38 = vrot.slane %v1506_v35, 6 }
 0x7a5   :  { %v1510_v39 = vpop.eup %1509  ;;  %1075 = vst [vmem:[%s2201_s3 + $0x1f] sm:$0x1] %v1508_v37  ;;  %v1092_v40 = vsel %vm210_vm1, %v1091_v36, %v1502_v33  ;;  %v1095_v41 = vrot.slane %v1508_v37, 5 }
 0x7a6   :  { %v1512_v42 = vpop.eup %1511  ;;  %1076 = vst [vmem:[%s2201_s3 + $0x27] sm:$0x1] %v1510_v39  ;;  %v1094_v43 = vsel %vm213_vm2, %v1093_v38, %v1092_v40  ;;  %v1097_v44 = vrot.slane %v1510_v39, 4 }
 0x7a7   :  { %v1514_v45 = vpop.eup %1513  ;;  %1077 = vst [vmem:[%s2201_s3 + $0x2f] sm:$0x1] %v1512_v42  ;;  %v1096_v46 = vsel %vm216_vm3, %v1095_v41, %v1094_v43  ;;  %v1099_v47 = vrot.slane %v1512_v42, 3 }
 0x7a8   :  { %v1516_v48 = vpop.eup %1515  ;;  %1078 = vst [vmem:[%s2201_s3 + $0x37] sm:$0x1] %v1514_v45  ;;  %v1098_v49 = vsel %vm219_vm4, %v1097_v44, %v1096_v46  ;;  %v1101_v50 = vrot.slane %v1514_v45, 2 }
 0x7a9   :  { %1079 = vst [vmem:[%s2201_s3 + $0x3f] sm:$0x1] %v1516_v48  ;;  %v1100_v51 = vsel %vm222_vm5, %v1099_v47, %v1098_v49  ;;  %v1103_v52 = vrot.slane %v1516_v48, 1 }
 0x7aa   :  { %v1102_v53 = vsel %vm225_vm6, %v1101_v50, %v1100_v51 }
 0x7ab   :  { %v1104_v54 = vsel %vm228_vm7, %v1103_v52, %v1102_v53 }
 0x7ac   :  { %1106 = vst [vmem:[%s2202_s4] sm:$0xff] %v1104_v54 }

</bundles_post_ra>
